<compile_context>
chip_gen: v7x
topology: tpu7x:2x2x1
jax: 0.10.0
libtpu: 0.0.40
codegen_flags: <defaults>
</compile_context>

<pallas_src>
import jax
import jax.numpy as jnp
from jax.experimental import pallas as pl
from jax.experimental.pallas import tpu as pltpu

C = 64           # per-branch channels (fixed by the module)
C3 = 3 * C       # 192
R1 = C // 16     # 4
R2 = C // 8      # 8
_NBCOLS = R1 + R2 + 3    # columns of the column-pack: w2 | w4 | b2 | b4 | (b1;b3)


def ff_subnet_kernel(y1_ref, y2_ref, y3_ref, rp_ref, cp_ref, out_ref):
    # Packed parameters (tiny; re-loaded each grid step, negligible traffic).
    rp = rp_ref[...]                          # (R1+R2, 192): [w1 ; w3], 192 on lanes
    cp = cp_ref[...]                          # (192, 15):    [w2 | w4 | b2 | b4 | b1/b3]
    w1 = rp[:R1, :]                           # (4, 192)
    w3 = rp[R1:, :]                           # (8, 192)
    w2 = cp[:, :R1]                           # (192, 4)
    w4 = cp[:, R1:R1 + R2]                    # (192, 8)
    b2 = cp[:, R1 + R2:R1 + R2 + 1]           # (192, 1)
    b4 = cp[:, R1 + R2 + 1:R1 + R2 + 2]       # (192, 1)
    b1 = cp[:R1, R1 + R2 + 2:]                # (4, 1)
    b3 = cp[R1:R1 + R2, R1 + R2 + 2:]         # (8, 1)

    bblk = y1_ref.shape[0]
    inv_hw = jnp.float32(1.0 / y1_ref.shape[-1])

    # AdaptiveAvgPool2d(1) for the whole batch tile at once. Reducing the lane
    # axis (keepdims) leaves channels on sublanes -> (bblk, C, 1) columns that
    # feed the matvecs and the final scaling without any relayout.
    m1 = jnp.sum(y1_ref[...].astype(jnp.float32), axis=-1, keepdims=True) * inv_hw
    m2 = jnp.sum(y2_ref[...].astype(jnp.float32), axis=-1, keepdims=True) * inv_hw
    m3 = jnp.sum(y3_ref[...].astype(jnp.float32), axis=-1, keepdims=True) * inv_hw

    for i in range(bblk):                     # static unroll over the batch tile
        # conv1 (1x1) on the concatenated pooled vector; the 192-contraction is
        # split over the three branches so no in-kernel concat is needed.
        h = (jnp.dot(w1[:, :C], m1[i], preferred_element_type=jnp.float32)
             + jnp.dot(w1[:, C:2 * C], m2[i], preferred_element_type=jnp.float32)
             + jnp.dot(w1[:, 2 * C:], m3[i], preferred_element_type=jnp.float32)
             + b1)
        h = jnp.maximum(h, 0.0)                                                         # (4, 1)
        h = jnp.maximum(jnp.dot(w2, h, preferred_element_type=jnp.float32) + b2, 0.0)   # (192, 1)
        h = jnp.maximum(jnp.dot(w3, h, preferred_element_type=jnp.float32) + b3, 0.0)   # (8, 1)
        h = jnp.maximum(jnp.dot(w4, h, preferred_element_type=jnp.float32) + b4, 0.0)   # (192, 1)

        # y.view(-1,3,64)[:,:,:,None,None] -> per-branch per-channel scales,
        # already channel-on-sublanes, matching the (C, HW) feature slabs.
        s1 = h[:C]
        s2 = h[C:2 * C]
        s3 = h[2 * C:]

        # Upcast on-chip; HBM traffic stays in the caller's dtype.
        y1 = y1_ref[i].astype(jnp.float32)    # (C, HW)
        y2 = y2_ref[i].astype(jnp.float32)
        y3 = y3_ref[i].astype(jnp.float32)
        out_ref[i] = (s1 * y1 + s2 * y2 + s3 * y3).astype(out_ref.dtype)


def _pack_params(p):
    """Pack the 8 tiny conv weights/biases into 2 lane-dense f32 arrays."""
    rpack = jnp.concatenate(
        [p["w1"].astype(jnp.float32), p["w3"].astype(jnp.float32)], axis=0)   # (12, 192)
    b13 = jnp.zeros((C3, 1), jnp.float32)
    b13 = b13.at[:R1, 0].set(p["b1"].astype(jnp.float32).reshape(-1))
    b13 = b13.at[R1:R1 + R2, 0].set(p["b3"].astype(jnp.float32).reshape(-1))
    cpack = jnp.concatenate(
        [p["w2"].astype(jnp.float32),                    # (192, 4)
         p["w4"].astype(jnp.float32),                    # (192, 8)
         p["b2"].astype(jnp.float32).reshape(C3, 1),     # (192, 1)
         p["b4"].astype(jnp.float32).reshape(C3, 1),     # (192, 1)
         b13],                                           # (192, 1)
        axis=1)                                          # (192, 15)
    return rpack, cpack


def _pick_bblk(B, HW, itemsize):
    """Batch-tile size: big enough to amortise per-step pipeline overhead, small
    enough that the 2x-buffered working set fits v7x's 64 MiB physical VMEM."""
    elem_bytes = C * HW * itemsize                    # one branch, one batch element
    f32_tmp = 0 if itemsize == 4 else 3 * C * HW * 4  # on-chip upcast temporaries
    per_b = 2 * 4 * elem_bytes + f32_tmp              # 2x-buffered (3 in + 1 out) + temps
    target_block = 2 * 1024 * 1024                    # ~2 MiB per input block
    vmem_budget = 40 * 1024 * 1024
    max_bblk = 16                                     # bound the static unroll
    bblk = max(1, min(B,
                      max(1, target_block // elem_bytes),
                      max(1, vmem_budget // per_b),
                      max_bblk))
    if B >= 2:                                        # keep >= 2 grid steps (both v7x TCs fed)
        bblk = max(1, min(bblk, B // 2))
    while B % bblk:                                   # exact tiling of the batch
        bblk -= 1
    return bblk, per_b


def ff_subnet(y1, y2, y3, params):
    B, Cc, H, W = y1.shape
    assert Cc == C
    HW = H * W
    dtype = y1.dtype

    # No dtype cast here: stream the caller's dtype through HBM, upcast in-kernel.
    y1f = y1.reshape(B, C, HW)
    y2f = y2.reshape(B, C, HW)
    y3f = y3.reshape(B, C, HW)
    rpack, cpack = _pack_params(params)

    bblk, per_b = _pick_bblk(B, HW, dtype.itemsize)
    grid = (B // bblk,)
    # TODO(synk): for feature maps too large for one (C, HW) slab in VMEM, split
    # into a pool+MLP pass (HW grid axis, 'arbitrary') plus a tiled scale pass.

    vmem_limit = int(per_b * bblk) + (2 << 20)        # + packed params / headroom
    vmem_limit = max(vmem_limit, 16 << 20)
    vmem_limit = min(vmem_limit, 48 << 20)

    inout_spec = pl.BlockSpec((bblk, C, HW), lambda g: (g, 0, 0))

    out = pl.pallas_call(
        ff_subnet_kernel,
        out_shape=jax.ShapeDtypeStruct((B, C, HW), dtype),
        grid_spec=pltpu.PrefetchScalarGridSpec(
            num_scalar_prefetch=0,
            grid=grid,
            in_specs=[
                inout_spec, inout_spec, inout_spec,
                pl.BlockSpec((R1 + R2, C3), lambda g: (0, 0)),
                pl.BlockSpec((C3, _NBCOLS), lambda g: (0, 0)),
            ],
            out_specs=inout_spec,
        ),
        compiler_params=pltpu.CompilerParams(
            dimension_semantics=("parallel",),
            vmem_limit_bytes=vmem_limit),
    )(y1f, y2f, y3f, rpack, cpack)
    return out.reshape(B, C, H, W)


def ff_subnet_ref(y1, y2, y3, p):
    # Pure-JAX reference mirroring the PyTorch forward (NCHW).
    B = y1.shape[0]
    ycat = jnp.concatenate([y1, y2, y3], axis=1).astype(jnp.float32)
    v = jnp.mean(ycat, axis=(2, 3))                     # (B, 192)  == AAP2d(1)
    h = jax.nn.relu(v @ p["w1"].T + p["b1"])
    h = jax.nn.relu(h @ p["w2"].T + p["b2"])
    h = jax.nn.relu(h @ p["w3"].T + p["b3"])
    h = jax.nn.relu(h @ p["w4"].T + p["b4"])            # (B, 192)
    s = h.reshape(B, 3, C)[:, :, :, None, None]
    out = s[:, 0] * y1 + s[:, 1] * y2 + s[:, 2] * y3
    return out.astype(y1.dtype)


def make_params(key):
    ks = jax.random.split(key, 8)
    # 1x1 conv kernels squeezed to (out_ch, in_ch); biases are (out_ch,).
    return {
        "w1": jax.random.normal(ks[0], (R1, C3), jnp.float32) * 0.1,
        "b1": jax.random.normal(ks[1], (R1,), jnp.float32) * 0.05,
        "w2": jax.random.normal(ks[2], (C3, R1), jnp.float32) * 0.1,
        "b2": jax.random.normal(ks[3], (C3,), jnp.float32) * 0.05,
        "w3": jax.random.normal(ks[4], (R2, C3), jnp.float32) * 0.1,
        "b3": jax.random.normal(ks[5], (R2,), jnp.float32) * 0.05,
        "w4": jax.random.normal(ks[6], (C3, R2), jnp.float32) * 0.1,
        "b4": jax.random.normal(ks[7], (C3,), jnp.float32) * 0.05,
    }


if __name__ == "__main__":
    key = jax.random.PRNGKey(0)
    kp, k1, k2, k3 = jax.random.split(key, 4)
    params = make_params(kp)

    B, H, W = 2, 16, 16
    y1 = jax.random.normal(k1, (B, C, H, W), jnp.float32)
    y2 = jax.random.normal(k2, (B, C, H, W), jnp.float32)
    y3 = jax.random.normal(k3, (B, C, H, W), jnp.float32)

    out = ff_subnet(y1, y2, y3, params)
    jax.block_until_ready(out)

    ref = ff_subnet_ref(y1, y2, y3, params)
    assert out.shape == (B, C, H, W)
    assert jnp.allclose(out, ref, rtol=1e-3, atol=1e-3), "mismatch vs reference"
    print("KERNEL_OK")
</pallas_src>

<mosaic_0001>
module attributes {stable_mosaic.version = 11 : i64} {
  func.func @ff_subnet_kernel(%arg0: i32, %arg1: memref<1x64x256xf32, #tpu.memory_space<vmem>>, %arg2: memref<1x64x256xf32, #tpu.memory_space<vmem>>, %arg3: memref<1x64x256xf32, #tpu.memory_space<vmem>>, %arg4: memref<12x192xf32, #tpu.memory_space<vmem>>, %arg5: memref<192x15xf32, #tpu.memory_space<vmem>>, %arg6: memref<1x64x256xf32, #tpu.memory_space<vmem>>) attributes {dimension_semantics = [#tpu.dimension_semantics<parallel>], iteration_bounds = array<i64: 2>, scalar_prefetch = 0 : i64, scratch_operands = 0 : i64, tpu.core_type = #tpu.core_type<tc>, window_params = [{transform_indices = @transform_0, window_bounds = array<i64: 1, 64, 256>}, {transform_indices = @transform_1, window_bounds = array<i64: 1, 64, 256>}, {transform_indices = @transform_2, window_bounds = array<i64: 1, 64, 256>}, {pipeline_mode = #tpu.pipeline_mode<synchronous>, transform_indices = @transform_3, window_bounds = array<i64: 12, 192>}, {pipeline_mode = #tpu.pipeline_mode<synchronous>, transform_indices = @transform_4, window_bounds = array<i64: 192, 15>}, {transform_indices = @transform_5, window_bounds = array<i64: 1, 64, 256>}]} {
    %c0 = arith.constant 0 : index
    %c0_0 = arith.constant 0 : index
    %0 = vector.load %arg4[%c0, %c0_0] : memref<12x192xf32, #tpu.memory_space<vmem>>, vector<12x192xf32>
    %c0_1 = arith.constant 0 : index
    %c0_2 = arith.constant 0 : index
    %1 = vector.load %arg5[%c0_1, %c0_2] : memref<192x15xf32, #tpu.memory_space<vmem>>, vector<192x15xf32>
    %2 = vector.extract_strided_slice %0 {offsets = [0, 0], sizes = [4, 192], strides = [1, 1]} : vector<12x192xf32> to vector<4x192xf32>
    %3 = vector.extract_strided_slice %0 {offsets = [4, 0], sizes = [8, 192], strides = [1, 1]} : vector<12x192xf32> to vector<8x192xf32>
    %4 = vector.extract_strided_slice %1 {offsets = [0, 0], sizes = [192, 4], strides = [1, 1]} : vector<192x15xf32> to vector<192x4xf32>
    %5 = vector.extract_strided_slice %1 {offsets = [0, 4], sizes = [192, 8], strides = [1, 1]} : vector<192x15xf32> to vector<192x8xf32>
    %6 = vector.extract_strided_slice %1 {offsets = [0, 12], sizes = [192, 1], strides = [1, 1]} : vector<192x15xf32> to vector<192x1xf32>
    %7 = vector.extract_strided_slice %1 {offsets = [0, 13], sizes = [192, 1], strides = [1, 1]} : vector<192x15xf32> to vector<192x1xf32>
    %8 = vector.extract_strided_slice %1 {offsets = [0, 14], sizes = [4, 1], strides = [1, 1]} : vector<192x15xf32> to vector<4x1xf32>
    %9 = vector.extract_strided_slice %1 {offsets = [4, 14], sizes = [8, 1], strides = [1, 1]} : vector<192x15xf32> to vector<8x1xf32>
    %c0_3 = arith.constant 0 : index
    %c0_4 = arith.constant 0 : index
    %c0_5 = arith.constant 0 : index
    %10 = vector.load %arg1[%c0_3, %c0_4, %c0_5] : memref<1x64x256xf32, #tpu.memory_space<vmem>>, vector<1x64x256xf32>
    %cst = arith.constant dense<0.000000e+00> : vector<1x64xf32>
    %11 = vector.multi_reduction <add>, %10, %cst [2] : vector<1x64x256xf32> to vector<1x64xf32>
    %12 = vector.shape_cast %11 : vector<1x64xf32> to vector<1x64x1xf32>
    %cst_6 = arith.constant 3.906250e-03 : f32
    %13 = vector.broadcast %cst_6 : f32 to vector<1x64x1xf32>
    %14 = arith.mulf %12, %13 : vector<1x64x1xf32>
    %c0_7 = arith.constant 0 : index
    %c0_8 = arith.constant 0 : index
    %c0_9 = arith.constant 0 : index
    %15 = vector.load %arg2[%c0_7, %c0_8, %c0_9] : memref<1x64x256xf32, #tpu.memory_space<vmem>>, vector<1x64x256xf32>
    %cst_10 = arith.constant dense<0.000000e+00> : vector<1x64xf32>
    %16 = vector.multi_reduction <add>, %15, %cst_10 [2] : vector<1x64x256xf32> to vector<1x64xf32>
    %17 = vector.shape_cast %16 : vector<1x64xf32> to vector<1x64x1xf32>
    %cst_11 = arith.constant 3.906250e-03 : f32
    %18 = vector.broadcast %cst_11 : f32 to vector<1x64x1xf32>
    %19 = arith.mulf %17, %18 : vector<1x64x1xf32>
    %c0_12 = arith.constant 0 : index
    %c0_13 = arith.constant 0 : index
    %c0_14 = arith.constant 0 : index
    %20 = vector.load %arg3[%c0_12, %c0_13, %c0_14] : memref<1x64x256xf32, #tpu.memory_space<vmem>>, vector<1x64x256xf32>
    %cst_15 = arith.constant dense<0.000000e+00> : vector<1x64xf32>
    %21 = vector.multi_reduction <add>, %20, %cst_15 [2] : vector<1x64x256xf32> to vector<1x64xf32>
    %22 = vector.shape_cast %21 : vector<1x64xf32> to vector<1x64x1xf32>
    %cst_16 = arith.constant 3.906250e-03 : f32
    %23 = vector.broadcast %cst_16 : f32 to vector<1x64x1xf32>
    %24 = arith.mulf %22, %23 : vector<1x64x1xf32>
    %25 = vector.extract_strided_slice %2 {offsets = [0, 0], sizes = [4, 64], strides = [1, 1]} : vector<4x192xf32> to vector<4x64xf32>
    %26 = vector.shape_cast %14 : vector<1x64x1xf32> to vector<64x1xf32>
    %cst_17 = arith.constant dense<0.000000e+00> : vector<4x1xf32>
    %27 = tpu.matmul %25, %26, %cst_17 {dimension_numbers = #tpu.dot_dimension_numbers<[1], [0], [0], [1], [0, 0, 1, 1], [], []>} : vector<4x64xf32>, vector<64x1xf32>, vector<4x1xf32> -> vector<4x1xf32>
    %28 = vector.extract_strided_slice %2 {offsets = [0, 64], sizes = [4, 64], strides = [1, 1]} : vector<4x192xf32> to vector<4x64xf32>
    %29 = vector.shape_cast %19 : vector<1x64x1xf32> to vector<64x1xf32>
    %cst_18 = arith.constant dense<0.000000e+00> : vector<4x1xf32>
    %30 = tpu.matmul %28, %29, %cst_18 {dimension_numbers = #tpu.dot_dimension_numbers<[1], [0], [0], [1], [0, 0, 1, 1], [], []>} : vector<4x64xf32>, vector<64x1xf32>, vector<4x1xf32> -> vector<4x1xf32>
    %31 = arith.addf %27, %30 : vector<4x1xf32>
    %32 = vector.extract_strided_slice %2 {offsets = [0, 128], sizes = [4, 64], strides = [1, 1]} : vector<4x192xf32> to vector<4x64xf32>
    %33 = vector.shape_cast %24 : vector<1x64x1xf32> to vector<64x1xf32>
    %cst_19 = arith.constant dense<0.000000e+00> : vector<4x1xf32>
    %34 = tpu.matmul %32, %33, %cst_19 {dimension_numbers = #tpu.dot_dimension_numbers<[1], [0], [0], [1], [0, 0, 1, 1], [], []>} : vector<4x64xf32>, vector<64x1xf32>, vector<4x1xf32> -> vector<4x1xf32>
    %35 = arith.addf %31, %34 : vector<4x1xf32>
    %36 = arith.addf %35, %8 : vector<4x1xf32>
    %cst_20 = arith.constant 0.000000e+00 : f32
    %37 = vector.broadcast %cst_20 : f32 to vector<4x1xf32>
    %38 = arith.maximumf %36, %37 : vector<4x1xf32>
    %cst_21 = arith.constant dense<0.000000e+00> : vector<192x1xf32>
    %39 = tpu.matmul %4, %38, %cst_21 {dimension_numbers = #tpu.dot_dimension_numbers<[1], [0], [0], [1], [0, 0, 1, 1], [], []>} : vector<192x4xf32>, vector<4x1xf32>, vector<192x1xf32> -> vector<192x1xf32>
    %40 = arith.addf %39, %6 : vector<192x1xf32>
    %cst_22 = arith.constant 0.000000e+00 : f32
    %41 = vector.broadcast %cst_22 : f32 to vector<192x1xf32>
    %42 = arith.maximumf %40, %41 : vector<192x1xf32>
    %cst_23 = arith.constant dense<0.000000e+00> : vector<8x1xf32>
    %43 = tpu.matmul %3, %42, %cst_23 {dimension_numbers = #tpu.dot_dimension_numbers<[1], [0], [0], [1], [0, 0, 1, 1], [], []>} : vector<8x192xf32>, vector<192x1xf32>, vector<8x1xf32> -> vector<8x1xf32>
    %44 = arith.addf %43, %9 : vector<8x1xf32>
    %cst_24 = arith.constant 0.000000e+00 : f32
    %45 = vector.broadcast %cst_24 : f32 to vector<8x1xf32>
    %46 = arith.maximumf %44, %45 : vector<8x1xf32>
    %cst_25 = arith.constant dense<0.000000e+00> : vector<192x1xf32>
    %47 = tpu.matmul %5, %46, %cst_25 {dimension_numbers = #tpu.dot_dimension_numbers<[1], [0], [0], [1], [0, 0, 1, 1], [], []>} : vector<192x8xf32>, vector<8x1xf32>, vector<192x1xf32> -> vector<192x1xf32>
    %48 = arith.addf %47, %7 : vector<192x1xf32>
    %cst_26 = arith.constant 0.000000e+00 : f32
    %49 = vector.broadcast %cst_26 : f32 to vector<192x1xf32>
    %50 = arith.maximumf %48, %49 : vector<192x1xf32>
    %51 = vector.extract_strided_slice %50 {offsets = [0, 0], sizes = [64, 1], strides = [1, 1]} : vector<192x1xf32> to vector<64x1xf32>
    %52 = vector.extract_strided_slice %50 {offsets = [64, 0], sizes = [64, 1], strides = [1, 1]} : vector<192x1xf32> to vector<64x1xf32>
    %53 = vector.extract_strided_slice %50 {offsets = [128, 0], sizes = [64, 1], strides = [1, 1]} : vector<192x1xf32> to vector<64x1xf32>
    %c0_27 = arith.constant 0 : index
    %c0_28 = arith.constant 0 : index
    %c0_29 = arith.constant 0 : index
    %54 = vector.load %arg1[%c0_27, %c0_28, %c0_29] : memref<1x64x256xf32, #tpu.memory_space<vmem>>, vector<1x64x256xf32>
    %55 = vector.shape_cast %54 : vector<1x64x256xf32> to vector<64x256xf32>
    %c0_30 = arith.constant 0 : index
    %c0_31 = arith.constant 0 : index
    %c0_32 = arith.constant 0 : index
    %56 = vector.load %arg2[%c0_30, %c0_31, %c0_32] : memref<1x64x256xf32, #tpu.memory_space<vmem>>, vector<1x64x256xf32>
    %57 = vector.shape_cast %56 : vector<1x64x256xf32> to vector<64x256xf32>
    %c0_33 = arith.constant 0 : index
    %c0_34 = arith.constant 0 : index
    %c0_35 = arith.constant 0 : index
    %58 = vector.load %arg3[%c0_33, %c0_34, %c0_35] : memref<1x64x256xf32, #tpu.memory_space<vmem>>, vector<1x64x256xf32>
    %59 = vector.shape_cast %58 : vector<1x64x256xf32> to vector<64x256xf32>
    %60 = vector.broadcast %51 : vector<64x1xf32> to vector<64x256xf32>
    %61 = arith.mulf %60, %55 : vector<64x256xf32>
    %62 = vector.broadcast %52 : vector<64x1xf32> to vector<64x256xf32>
    %63 = arith.mulf %62, %57 : vector<64x256xf32>
    %64 = arith.addf %61, %63 : vector<64x256xf32>
    %65 = vector.broadcast %53 : vector<64x1xf32> to vector<64x256xf32>
    %66 = arith.mulf %65, %59 : vector<64x256xf32>
    %67 = arith.addf %64, %66 : vector<64x256xf32>
    %c0_36 = arith.constant 0 : index
    %c0_37 = arith.constant 0 : index
    %c0_38 = arith.constant 0 : index
    %68 = vector.load %arg6[%c0_36, %c0_37, %c0_38] : memref<1x64x256xf32, #tpu.memory_space<vmem>>, vector<1x64x256xf32>
    %69 = vector.shape_cast %68 : vector<1x64x256xf32> to vector<64x256xf32>
    %70 = vector.shape_cast %67 : vector<64x256xf32> to vector<1x64x256xf32>
    tpu.vector_store %arg6[%c0_36, %c0_37, %c0_38], %70 {strides = array<i32>} : memref<1x64x256xf32, #tpu.memory_space<vmem>>, vector<1x64x256xf32>,
    return
  }
  func.func @transform_0(%arg0: i32) -> (i32, i32, i32) {
    %c0_i32 = arith.constant 0 : i32
    %c0_i32_0 = arith.constant 0 : i32
    %c0_i32_1 = arith.constant 0 : i32
    return %arg0, %c0_i32, %c0_i32_0 : i32, i32, i32
  }
  func.func @transform_1(%arg0: i32) -> (i32, i32, i32) {
    %c0_i32 = arith.constant 0 : i32
    %c0_i32_0 = arith.constant 0 : i32
    %c0_i32_1 = arith.constant 0 : i32
    return %arg0, %c0_i32, %c0_i32_0 : i32, i32, i32
  }
  func.func @transform_2(%arg0: i32) -> (i32, i32, i32) {
    %c0_i32 = arith.constant 0 : i32
    %c0_i32_0 = arith.constant 0 : i32
    %c0_i32_1 = arith.constant 0 : i32
    return %arg0, %c0_i32, %c0_i32_0 : i32, i32, i32
  }
  func.func @transform_3(%arg0: i32) -> (i32, i32) {
    %c0_i32 = arith.constant 0 : i32
    %c0_i32_0 = arith.constant 0 : i32
    %c0_i32_1 = arith.constant 0 : i32
    return %c0_i32, %c0_i32_0 : i32, i32
  }
  func.func @transform_4(%arg0: i32) -> (i32, i32) {
    %c0_i32 = arith.constant 0 : i32
    %c0_i32_0 = arith.constant 0 : i32
    %c0_i32_1 = arith.constant 0 : i32
    return %c0_i32, %c0_i32_0 : i32, i32
  }
  func.func @transform_5(%arg0: i32) -> (i32, i32, i32) {
    %c0_i32 = arith.constant 0 : i32
    %c0_i32_0 = arith.constant 0 : i32
    %c0_i32_1 = arith.constant 0 : i32
    return %arg0, %c0_i32, %c0_i32_0 : i32, i32, i32
  }
}

</mosaic_0001>

<bundles_post_ra>
// kernel: tpu_custom_call.1
= control target key start
LH: loop header
LB: loop body
LE: loop exit
PB: predicated region body
PF: predicated region fallthrough
CT: control target
= control target key end

     0   :  { %s3362_s0 = inlined_call_operand.hbm [shape: f32[2,64,256], index: 0, kind: input, shape index: {}]   ;;  %s3363_s1 = inlined_call_operand.hbm [shape: f32[2,64,256], index: 1, kind: input, shape index: {}]   ;;  %s3364_s2 = inlined_call_operand.hbm [shape: f32[2,64,256], index: 2, kind: input, shape index: {}]   ;;  %s3365_s3 = inlined_call_operand.vmem [shape: f32[12,192], index: 3, kind: input, shape index: {}]   ;;  %s3366_s4 = inlined_call_operand.vmem [shape: f32[192,15], index: 4, kind: input, shape index: {}]   ;;  %s3367_s5 = inlined_call_operand.hbm [shape: f32[2,64,256], index: 5, kind: output, shape index: {}]  }
   0x1   :  { %3375 = sst [smem:[#allocation13_spill]] %s3362_s0 }
   0x2   :  { %3376 = sst [smem:[#allocation14_spill]] %s3363_s1 }
   0x3   :  { %10 = vsyncpa [#allocation3], 0 }
   0x4   :  { %12 = vsyncpa [#allocation3 + $0x1], 0 }
   0x5   :  { %13 = vsyncpa [#allocation6], 0 }
   0x6   :  { %15 = vsyncpa [#allocation6 + $0x1], 0 }
   0x7   :  { %16 = vsyncpa [#allocation4], 0 }
   0x8   :  { %18 = vsyncpa [#allocation4 + $0x1], 0  ;;  %s2580_s18 = smov 0   ;;  %s2582_s19 = smov 0  }
   0x9   :  { %s2584_s20 = smov 0   ;;  %s2586_s21 = smov 0  }
   0xa LB: > { %s2601_s22 = sadd.s32 4294967295, %s2531_s21   ;;  %s1889_s23 = sadd.s32 4294967294, %s2531_s21   ;;  %s2531_s21 = sphi %s2586_s21, %s3399_s21   ;;  %s2527_s20 = sphi %s2584_s20, %s3398_s20   ;;  %s2523_s19 = sphi %s2582_s19, %s3397_s19   ;;  %s2519_s18 = sphi %s2580_s18, %s3396_s18  }
   0xb   : > { %s2605_s24 = sadd.s32 1, %s2531_s21   ;;  %s31_s25 = sadd.s32 1, %s2527_s20 }
   0xc   : > { %s28_s26 = ssub.s32 %s2531_s21, %s2605_s24  ;;  %p38_p0 = scmp.ne.s32.totalorder %s2527_s20, %s2523_s19 }
   0xd   : > { %p29_p1 = scmp.eq.s32.totalorder %s28_s26, 0  ;;  %p39_p2 = scmp.eq.s32.totalorder %s2531_s21, 0 }
   0xe   : > { %p44_p3 = scmp.ne.s32.totalorder %s2523_s19, %s2519_s18  ;;  %p45_p4 = scmp.eq.s32.totalorder %s2601_s22, 0 }
   0xf   : > { %s2617_s27 = scalar_select %p29_p1, %s2527_s20, %s31_s25  }
  0x10   : > { %p40_p5 = por %p39_p2, %p38_p0  ;;  %p2619_p6 = por %p45_p4, %p44_p3 }
  0x11   : > { %3377 = sst [smem:[#allocation12_spill]] %s2617_s27  ;;  %p162_p7 = scmp.eq.s32.totalorder %s2601_s22, 1 }
  0x12   : > { %s3378_s28 = scalar_select %p2619_p6, 1, 0 }
  0x13   : > { %p168_p8 = scmp.eq.s32.totalorder %s1889_s23, 1  ;;  %p2274_p10 = scmp.lt.s32.totalorder %s2531_s21, 2 }
  0x14   : > { %p2626_p11 = por %p162_p7, %p38_p0  ;;  %s3370_s6 = sand.u32 1, %s2527_s20  }
  0x15   : > { %p2630_p12 = por %p168_p8, %p44_p3  ;;  %s2636_s7 = sshll.u32 %s2531_s21, 11 }
  0x16   : > { %s3379_s29 = scalar_select %p2626_p11, 1, 0 }
  0x17   : > { %s3380_s30 = scalar_select %p2630_p12, 1, 0 }
  0x18   : > { %s2640_s8 = sshll.u32 %s3370_s6, 7  ;;  %p2642_p13 = pnand %p2274_p10, %p40_p5 }
  0x19   : > { %s215_s10 = sand.u32 1, %s2531_s21   ;;  %s3382_s1 = sld [smem:[#allocation14_spill]] }
  0x1a   : > { %s219_s14 = scalar_lea.vmem [#allocation5], %s2640_s8  ;;  %s2657_s16 = scalar_lea.sflag [#allocation6], %s215_s10 }
  0x1b   : > { %s226_s15 = sshll.u32 %s219_s14, 4  ;;  %p2663_p2 = pneg %p2642_p13  ;;  %s2654_s15 = int_to_ptr.vmem [resolvable:$true] %s226_s15 }
  0x1f   : > { %s2651_s13 = scalar_lea.hbm %s3382_s1, %s2636_s7  ;;  %s2376_s11 = scalar_lea.hbm %s3382_s1, 4096 }
  0x20   : > { %s2371_s17 = scalar_lea.hbm %s2651_s13, 2048  ;;  %p2377_p5 = scmp.lt.u32.totalorder %s2651_s13, %s3382_s1 }
  0x21   : > { %p2372_p1 = scmp.ne.s32.totalorder %s2651_s13, %s2371_s17  ;;  %p2378_p7 = scmp.lt.u32.totalorder %s2376_s11, %s2371_s17 }
  0x22   : > { %p2380_p10 = scmp.lt.u32.totalorder %s2371_s17, %s2651_s13 }
  0x23   : > { %p2374_p3 = pnand %p2663_p2, %p2372_p1  ;;  %p2379_p8 = por %p2378_p7, %p2377_p5 }
  0x25   : > { %p2375_p4 = pneg %p2374_p3  ;;  %p2381_p9 = por %p2380_p10, %p2379_p8 }
  0x27   : > { %p2382_p0 = pnand %p2381_p9, %p2375_p4 }
  0x29   : > { %2385 = shalt.err (!%p2382_p0)
}
  0x2a   : > { %s2386_s10 = scalar_lea.vmem %s2654_s15, 2048  ;;  %s2533_s25 = smov [#allocation5]  }
  0x2b   : > { %p2387_p1 = scmp.ne.s32.totalorder %s2654_s15, %s2386_s10  ;;  %s2391_s26 = sshll.u32 %s2533_s25, 4  ;;  %s2392_s26 = int_to_ptr.vmem [resolvable:$false] %s2391_s26 }
  0x2c   : > { %s2393_s12 = scalar_lea.vmem %s2392_s26, 4096  ;;  %p2394_p11 = scmp.lt.s32.totalorder %s2654_s15, %s2392_s26 }
  0x2d   : > { %p2389_p3 = pnand %p2387_p1, %p2663_p2  ;;  %p2395_p6 = scmp.lt.s32.totalorder %s2393_s12, %s2386_s10 }
  0x2f   : > { %p2390_p12 = pneg %p2389_p3  ;;  %p2396_p5 = por %p2395_p6, %p2394_p11 }
  0x31   : > { %p2397_p7 = pnand %p2396_p5, %p2390_p12 }
  0x33   : > { %2400 = shalt.err (!%p2397_p7)
}
  0x34   : > { %s3371_s17 = smov 256   ;;  %s3373_s11 = smov 16  }
  0x35   : > { %2266 = dma.hbm_to_vmem [thread:$0]  (!%p2642_p13), %s2651_s13, 2048, %s2654_s15, %s2657_s16, %s3371_s17, %s3371_s17, %s3373_s11  }
  0x36   : > { %p255_p6 = scmp.lt.s32.totalorder %s2531_s21, 3  ;;  %s3384_s0 = sld [smem:[#allocation13_spill]] }
  0x37   : > { %p3385_p9 = scmp.ge.s32.totalorder %s2531_s21, 1  ;;  %s198_s12 = scalar_lea.vmem [#allocation2], %s2640_s8 }
  0x38   : > { %s205_s6 = sshll.u32 %s198_s12, 4  ;;  %s3387_s13 = sand.u32 1, %s2527_s20   ;;  %s2704_s6 = int_to_ptr.vmem [resolvable:$true] %s205_s6 }
  0x39   : > { %p2699_p11 = pnand %p3385_p9, %p255_p6  ;;  %s2708_s15 = scalar_lea.sflag [#allocation3], %s3387_s13 }
  0x3b   : > { %s3386_s26 = scalar_select %p2699_p11, 1, 0 }
  0x3c   : > { %s2695_s25 = scalar_lea.hbm %s3384_s0, %s2636_s7  ;;  %s2406_s11 = scalar_lea.hbm %s3384_s0, 4096 }
  0x3d   : > { %s2401_s17 = scalar_lea.hbm %s2695_s25, 2048  ;;  %p2407_p8 = scmp.lt.u32.totalorder %s2695_s25, %s3384_s0 }
  0x3e   : > { %p2402_p12 = scmp.ne.s32.totalorder %s2695_s25, %s2401_s17  ;;  %p2408_p10 = scmp.lt.u32.totalorder %s2406_s11, %s2401_s17 }
  0x3f   : > { %p2410_p3 = scmp.lt.u32.totalorder %s2401_s17, %s2695_s25 }
  0x40   : > { %p2404_p0 = pnand %p2402_p12, %p2663_p2  ;;  %p2409_p1 = por %p2408_p10, %p2407_p8 }
  0x42   : > { %p2405_p4 = pneg %p2404_p0  ;;  %p2411_p5 = por %p2410_p3, %p2409_p1 }
  0x44   : > { %p2412_p7 = pnand %p2411_p5, %p2405_p4 }
  0x46   : > { %2415 = shalt.err (!%p2412_p7)
}
  0x47   : > { %s2416_s12 = scalar_lea.vmem %s2704_s6, 2048  ;;  %s2536_s13 = smov [#allocation2]  }
  0x48   : > { %p2417_p6 = scmp.ne.s32.totalorder %s2704_s6, %s2416_s12  ;;  %s2421_s14 = sshll.u32 %s2536_s13, 4  ;;  %s2422_s14 = int_to_ptr.vmem [resolvable:$false] %s2421_s14 }
  0x49   : > { %s2423_s1 = scalar_lea.vmem %s2422_s14, 4096  ;;  %p2424_p0 = scmp.lt.s32.totalorder %s2704_s6, %s2422_s14 }
  0x4a   : > { %p2419_p9 = pnand %p2417_p6, %p2663_p2  ;;  %p2425_p11 = scmp.lt.s32.totalorder %s2423_s1, %s2416_s12 }
  0x4c   : > { %p2420_p12 = pneg %p2419_p9  ;;  %p2426_p8 = por %p2425_p11, %p2424_p0 }
  0x4e   : > { %p2427_p10 = pnand %p2426_p8, %p2420_p12 }
  0x50   : > { %2430 = shalt.err (!%p2427_p10)
}
  0x51   : > { %s3388_s27 = smov 16   ;;  %s3389_s17 = smov 256  }
  0x52   : > { %2263 = dma.hbm_to_vmem [thread:$0]  (!%p2642_p13), %s2695_s25, 2048, %s2704_s6, %s2708_s15, %s3389_s17, %s3389_s17, %s3388_s27  }
  0x53   : > { %s2739_s13 = scalar_lea.hbm %s3364_s2, %s2636_s7  ;;  %s240_s12 = scalar_lea.vmem [#allocation7], %s2640_s8 }
  0x54   : > { %s247_s14 = sshll.u32 %s240_s12, 4  ;;  %s2431_s1 = scalar_lea.hbm %s2739_s13, 2048  ;;  %s2742_s14 = int_to_ptr.vmem [resolvable:$true] %s247_s14 }
  0x55   : > { %p2432_p11 = scmp.ne.s32.totalorder %s2739_s13, %s2431_s1  ;;  %s2436_s25 = scalar_lea.hbm %s3364_s2, 4096 }
  0x56   : > { %p2437_p3 = scmp.lt.u32.totalorder %s2739_s13, %s3364_s2  ;;  %p2438_p5 = scmp.lt.u32.totalorder %s2436_s25, %s2431_s1 }
  0x57   : > { %p2434_p4 = pnand %p2432_p11, %p2663_p2  ;;  %p2440_p6 = scmp.lt.u32.totalorder %s2431_s1, %s2739_s13 }
  0x58   : > { %p2439_p7 = por %p2438_p5, %p2437_p3 }
  0x59   : > { %p2435_p1 = pneg %p2434_p4 }
  0x5a   : > { %p2441_p9 = por %p2440_p6, %p2439_p7 }
  0x5c   : > { %p2442_p12 = pnand %p2441_p9, %p2435_p1 }
  0x5e   : > { %2445 = shalt.err (!%p2442_p12)
}
  0x5f   : > { %s2446_s8 = scalar_lea.vmem %s2742_s14, 2048  ;;  %s2537_s0 = smov [#allocation7]  }
  0x60   : > { %p2447_p0 = scmp.ne.s32.totalorder %s2742_s14, %s2446_s8  ;;  %s2451_s11 = sshll.u32 %s2537_s0, 4  ;;  %s2452_s11 = int_to_ptr.vmem [resolvable:$false] %s2451_s11 }
  0x61   : > { %s2453_s10 = scalar_lea.vmem %s2452_s11, 4096  ;;  %p2454_p11 = scmp.lt.s32.totalorder %s2742_s14, %s2452_s11 }
  0x62   : > { %p2449_p8 = pnand %p2447_p0, %p2663_p2  ;;  %p2455_p4 = scmp.lt.s32.totalorder %s2453_s10, %s2446_s8 }
  0x64   : > { %p2450_p10 = pneg %p2449_p8  ;;  %p2456_p3 = por %p2455_p4, %p2454_p11 }
  0x66   : > { %p2457_p5 = pnand %p2456_p3, %p2450_p10 }
  0x68   : > { %2460 = shalt.err (!%p2457_p5)
}
  0x69   : > { %2269 = dma.hbm_to_vmem [thread:$0]  (!%p2642_p13), %s2739_s13, 2048, %s2742_s14, %s2657_s16, %s3389_s17, %s3389_s17, %s3388_s27  }
  0x6a   : > { %p3390_p2 = scmp.ne.s32.totalorder %s3386_s26, 0 }
  0x6b   : > { %s2772_s23 = sand.u32 (!%p3390_p2), 1, %s2523_s19   ;;  %p3391_p1 = scmp.ne.s32.totalorder (!%p3390_p2), %s3378_s28, 0 }
  0x6c   : > { %259 = sbr.rel (%p3390_p2) target bundleno = 1445 (0x5a5), region = 40  ;;  %s2775_s12 = sshll.u32 (!%p3390_p2), %s2772_s23, 7 }
  0x6d   : > { %s262_s9 = scalar_lea.sflag (!%p3390_p2), [#allocation3], %s2772_s23  ;;  %s2779_s1 = scalar_lea.vmem (!%p3390_p2), [#allocation2], %s2775_s12 }
  0x73   : > { %2506 = dma.done.wait (%p3391_p1), %s262_s9, 2048  }
  0x74   : > { %2508 = vsyncadd (%p3391_p1), %s262_s9, 4294965248  ;;  %s270_s16 = sand.u32 1, %s2601_s22   ;;  %s2787_s27 = scalar_lea.vmem [#allocation5], %s2775_s12 }
  0x75   : > { %s271_s26 = scalar_lea.sflag [#allocation6], %s270_s16 }
  0x76   : > { %2510 = dma.done.wait (%p3391_p1), %s271_s26, 4096  }
  0x77   : > { %2512 = vsyncadd (%p3391_p1), %s271_s26, 4294963200  ;;  %v400_v0 = vld [vmem:[%s2787_s27 + $0x20] sm:$0xff]  ;;  %v401_v1 = vld [vmem:[%s2787_s27 + $0x28] sm:$0xff]  ;;  %s2814_s28 = scalar_lea.vmem [#allocation7], %s2775_s12  ;;  %v2538_v44 = vmov 0.0|0.0   ;;  %vm2539_vm0 = vmmov 0  }
  0x78   : > { %v396_v2 = vld [vmem:[%s2787_s27] sm:$0xff]  ;;  %v418_v3 = vadd.f32 %v401_v1, %v400_v0  ;;  %v397_v4 = vld [vmem:[%s2787_s27 + $0x8] sm:$0xff]  ;;  %v402_v5 = vld [vmem:[%s2787_s27 + $0x30] sm:$0xff]  ;;  %2178 = vmatprep.subr.bf16.mxu0 %v2538_v44  ;;  %2190 = vmatprep.subr.bf16.mxu1 %v2538_v44  ;;  %s2541_s14 = smov 64   ;;  %s2542_s15 = smov 114   ;;  %vm495_vm1 = vcmask 523264  }
  0x79   : > { %v403_v6 = vld [vmem:[%s2787_s27 + $0x38] sm:$0xff]  ;;  %v412_v7 = vadd.f32 %v397_v4, %v396_v2  ;;  %v398_v8 = vld [vmem:[%s2787_s27 + $0x10] sm:$0xff]  ;;  %v404_v14 = vld [vmem:[%s2787_s27 + $0x40] sm:$0xff]  ;;  %vm815_vm2 = vcmask 31744   ;;  %s2543_s10 = smov 116   ;;  %vm864_vm3 = vcmask 1043456  }
  0x7a   : > { %v399_v9 = vld [vmem:[%s2787_s27 + $0x18] sm:$0xff]  ;;  %419 = vadd.xlane.f32.xlu1 %v418_v3  ;;  %v421_v10 = vadd.f32 %v403_v6, %v402_v5  ;;  %v406_v12 = vld [vmem:[%s2787_s27 + $0x50] sm:$0xff]  ;;  %v405_v15 = vld [vmem:[%s2787_s27 + $0x48] sm:$0xff]  ;;  %s2544_s8 = smov 124   ;;  %vm1285_vm4 = vcmask 64512   ;;  %s2545_s11 = smov 115  }
  0x7b   : > { %413 = vadd.xlane.f32.xlu0 %v412_v7  ;;  %v415_v11 = vadd.f32 %v399_v9, %v398_v8  ;;  %v407_v13 = vld [vmem:[%s2787_s27 + $0x58] sm:$0xff]  ;;  %v424_v17 = vadd.f32 %v405_v15, %v404_v14  ;;  %v410_v18 = vld [vmem:[%s2787_s27 + $0x70] sm:$0xff]  ;;  %v408_v20 = vld [vmem:[%s2787_s27 + $0x60] sm:$0xff]  ;;  %v2540_v9 = vmov 0.0   ;;  %s3255_s9 = scalar_lea.vmem [#allocation8], %s2775_s12  ;;  %s1967_s12 = sshll.u32 %s2601_s22, 11 }
  0x7c   : > { %v427_v16 = vadd.f32 %v407_v13, %v406_v12  ;;  %v411_v19 = vld [vmem:[%s2787_s27 + $0x78] sm:$0xff]  ;;  %v409_v21 = vld [vmem:[%s2787_s27 + $0x68] sm:$0xff]  ;;  %v350_v24 = vld [vmem:[%s2779_s1 + $0x10] sm:$0xff]  ;;  %2061 = vmatprep.mubr.msk.f32.mxu0 %vm2539_vm0, %v2540_v9  ;;  %2080 = vmatprep.mubr.msk.f32.mxu1 %vm2539_vm0, %v2540_v9  ;;  %s3314_s22 = scalar_lea.hbm %s3367_s5, %s1967_s12  ;;  %s1760_s26 = scalar_lea.sflag [#allocation4], %s2772_s23 }
  0x7d   : > { %v433_v22 = vadd.f32 %v411_v19, %v410_v18  ;;  %v430_v23 = vadd.f32 %v409_v21, %v408_v20  ;;  %v351_v25 = vld [vmem:[%s2779_s1 + $0x18] sm:$0xff]  ;;  %v348_v26 = vld [vmem:[%s2779_s1] sm:$0xff]  ;;  %v349_v27 = vld [vmem:[%s2779_s1 + $0x8] sm:$0xff]  ;;  %p3392_p7 = scmp.ne.s32.totalorder %s3379_s29, 0 }
  0x7e   : > { %422 = vadd.xlane.f32.xlu1 %v421_v10  ;;  %v367_v28 = vadd.f32 %v351_v25, %v350_v24  ;;  %v364_v29 = vadd.f32 %v349_v27, %v348_v26  ;;  %v446_v30 = vld [vmem:[%s2814_s28 + $0x10] sm:$0xff]  ;;  %v447_v31 = vld [vmem:[%s2814_s28 + $0x18] sm:$0xff]  ;;  %v444_v32 = vld [vmem:[%s2814_s28] sm:$0xff] }
  0x7f   : > { %416 = vadd.xlane.f32.xlu0 %v415_v11  ;;  %v445_v33 = vld [vmem:[%s2814_s28 + $0x8] sm:$0xff]  ;;  %v463_v34 = vadd.f32 %v447_v31, %v446_v30  ;;  %v354_v36 = vld [vmem:[%s2779_s1 + $0x30] sm:$0xff]  ;;  %v355_v37 = vld [vmem:[%s2779_s1 + $0x38] sm:$0xff] }
  0x80   : > { %v460_v35 = vadd.f32 %v445_v33, %v444_v32  ;;  %v352_v38 = vld [vmem:[%s2779_s1 + $0x20] sm:$0xff]  ;;  %v353_v39 = vld [vmem:[%s2779_s1 + $0x28] sm:$0xff]  ;;  %v373_v40 = vadd.f32 %v355_v37, %v354_v36  ;;  %v450_v42 = vld [vmem:[%s2814_s28 + $0x30] sm:$0xff] }
  0x81   : > { %v370_v41 = vadd.f32 %v353_v39, %v352_v38  ;;  %v451_v43 = vld [vmem:[%s2814_s28 + $0x38] sm:$0xff]  ;;  %v448_v45 = vld [vmem:[%s2814_s28 + $0x20] sm:$0xff]  ;;  %v449_v46 = vld [vmem:[%s2814_s28 + $0x28] sm:$0xff] }
  0x82   : > { %428 = vadd.xlane.f32.xlu1 %v427_v16  ;;  %v469_v47 = vadd.f32 %v451_v43, %v450_v42  ;;  %v466_v48 = vadd.f32 %v449_v46, %v448_v45  ;;  %v358_v49 = vld [vmem:[%s2779_s1 + $0x50] sm:$0xff]  ;;  %v359_v50 = vld [vmem:[%s2779_s1 + $0x58] sm:$0xff]  ;;  %v356_v51 = vld [vmem:[%s2779_s1 + $0x40] sm:$0xff] }
  0x83   : > { %425 = vadd.xlane.f32.xlu0 %v424_v17  ;;  %v357_v52 = vld [vmem:[%s2779_s1 + $0x48] sm:$0xff]  ;;  %v379_v53 = vadd.f32 %v359_v50, %v358_v49  ;;  %v454_v55 = vld [vmem:[%s2814_s28 + $0x50] sm:$0xff]  ;;  %v455_v56 = vld [vmem:[%s2814_s28 + $0x58] sm:$0xff] }
  0x84   : > { %v376_v54 = vadd.f32 %v357_v52, %v356_v51  ;;  %v452_v57 = vld [vmem:[%s2814_s28 + $0x40] sm:$0xff]  ;;  %v453_v58 = vld [vmem:[%s2814_s28 + $0x48] sm:$0xff]  ;;  %v475_v59 = vadd.f32 %v455_v56, %v454_v55  ;;  %v362_v61 = vld [vmem:[%s2779_s1 + $0x70] sm:$0xff] }
  0x85   : > { %v472_v60 = vadd.f32 %v453_v58, %v452_v57  ;;  %v363_v62 = vld [vmem:[%s2779_s1 + $0x78] sm:$0xff]  ;;  %v360_v63 = vld [vmem:[%s2779_s1 + $0x60] sm:$0xff]  ;;  %v361_v0 = vld [vmem:[%s2779_s1 + $0x68] sm:$0xff] }
  0x86   : > { %434 = vadd.xlane.f32.xlu1 %v433_v22  ;;  %v385_v1 = vadd.f32 %v363_v62, %v362_v61  ;;  %v382_v2 = vadd.f32 %v361_v0, %v360_v63  ;;  %v458_v3 = vld [vmem:[%s2814_s28 + $0x70] sm:$0xff]  ;;  %v459_v4 = vld [vmem:[%s2814_s28 + $0x78] sm:$0xff]  ;;  %v456_v5 = vld [vmem:[%s2814_s28 + $0x60] sm:$0xff] }
  0x87   : > { %431 = vadd.xlane.f32.xlu0 %v430_v23  ;;  %v457_v6 = vld [vmem:[%s2814_s28 + $0x68] sm:$0xff]  ;;  %v481_v7 = vadd.f32 %v459_v4, %v458_v3  ;;  %v2853_v10 = vld [vmem:[%s3365_s3] sm:$0xff] }
  0x88   : > { %v478_v8 = vadd.f32 %v457_v6, %v456_v5  ;;  %v2859_v11 = vld [vmem:[%s3366_s4] sm:$0xff] }
  0x8a   : > { %368 = vadd.xlane.f32.xlu1 %v367_v28 }
  0x8b   : > { %365 = vadd.xlane.f32.xlu0 %v364_v29 }
  0x8e   : > { %464 = vadd.xlane.f32.xlu1 %v463_v34 }
  0x8f   : > { %461 = vadd.xlane.f32.xlu0 %v460_v35 }
  0x92   : > { %374 = vadd.xlane.f32.xlu1 %v373_v40 }
  0x93   : > { %371 = vadd.xlane.f32.xlu0 %v370_v41 }
  0x96   : > { %470 = vadd.xlane.f32.xlu1 %v469_v47 }
  0x97   : > { %467 = vadd.xlane.f32.xlu0 %v466_v48 }
  0x9a   : > { %380 = vadd.xlane.f32.xlu1 %v379_v53 }
  0x9b   : > { %377 = vadd.xlane.f32.xlu0 %v376_v54 }
  0x9e   : > { %476 = vadd.xlane.f32.xlu1 %v475_v59 }
  0x9f   : > { %473 = vadd.xlane.f32.xlu0 %v472_v60 }
  0xa2   : > { %386 = vadd.xlane.f32.xlu1 %v385_v1 }
  0xa3   : > { %383 = vadd.xlane.f32.xlu0 %v382_v2 }
  0xa6   : > { %482 = vadd.xlane.f32.xlu1 %v481_v7 }
  0xa7   : > { %479 = vadd.xlane.f32.xlu0 %v478_v8 }
  0xb7   : > { %715 = vrot.lane.b32.xlu1 %v2859_v11, %s2542_s15 }
  0xbb   : > { %743 = vrot.lane.b32.xlu1 %v2859_v11, %s2543_s10 }
  0xbd   : > { %493 = vrot.lane.b32.xlu0 %v2853_v10, %s2541_s14 }
 0x107   : > { %v420_v12 = vpop.xlane.xlu1 %419 }
 0x108   : > { %v414_v13 = vpop.xlane.xlu0 %413  ;;  %v438_v16 = vmul.f32 0.00390625, %v420_v12 }
 0x109   : > { %v436_v17 = vmul.f32 0.00390625, %v414_v13  ;;  %v2890_v13 = vld [vmem:[%s3366_s4 + $0x10] sm:$0xff] }
 0x10a   : > { %747 = vrot.lane.b32.xlu0 %v2890_v13, %s2543_s10 }
 0x10b   : > { %v423_v14 = vpop.xlane.xlu1 %422 }
 0x10c   : > { %v417_v15 = vpop.xlane.xlu0 %416  ;;  %v439_v18 = vmul.f32 0.00390625, %v423_v14  ;;  %v2899_v14 = vld [vmem:[%s3366_s4 + $0x8] sm:$0xff] }
 0x10d   : > { %v437_v19 = vmul.f32 0.00390625, %v417_v15  ;;  %v2904_v15 = vld [vmem:[%s3366_s4 + $0x20] sm:$0xff]  ;;  %745 = vrot.lane.b32.xlu1 %v2899_v14, %s2543_s10 }
 0x10e   : > { %v2182_v23 = vpack.c.bf16 %v439_v18, %v438_v16  ;;  %751 = vrot.lane.b32.xlu0 %v2904_v15, %s2543_s10  ;;  %v2913_v16 = vld [vmem:[%s3366_s4 + $0x18] sm:$0xff]  ;;  %v2927_v18 = vld [vmem:[%s3366_s4 + $0x28] sm:$0xff] }
 0x10f   : > { %v429_v20 = vpop.xlane.xlu1 %428  ;;  %v2179_v21 = vpack.c.bf16 %v437_v19, %v436_v17  ;;  %v2918_v17 = vld [vmem:[%s3366_s4 + $0x30] sm:$0xff]  ;;  %v2932_v19 = vld [vmem:[%s3366_s4 + $0x40] sm:$0xff] }
 0x110   : > { %v426_v22 = vpop.xlane.xlu0 %425  ;;  %v441_v24 = vmul.f32 0.00390625, %v429_v20  ;;  %v2941_v20 = vld [vmem:[%s3366_s4 + $0x38] sm:$0xff] }
 0x111   : > { %2180 = vmatpush3.bf16.msra.mxu0 %v2179_v21  ;;  %v440_v25 = vmul.f32 0.00390625, %v426_v22  ;;  %749 = vrot.lane.b32.xlu1 %v2913_v16, %s2543_s10  ;;  %v2946_v21 = vld [vmem:[%s3366_s4 + $0x50] sm:$0xff]  ;;  %v2955_v22 = vld [vmem:[%s3366_s4 + $0x48] sm:$0xff] }
 0x112   : > { %2181 = vmatprep.subr.bf16.mxu0 %v2538_v44  ;;  %755 = vrot.lane.b32.xlu0 %v2918_v17, %s2543_s10 }
 0x113   : > { %v435_v26 = vpop.xlane.xlu1 %434  ;;  %v2185_v28 = vpack.c.bf16 %v441_v24, %v440_v25  ;;  %v2969_v24 = vld [vmem:[%s3366_s4 + $0x58] sm:$0xff]  ;;  %v2974_v25 = vld [vmem:[%s3366_s4 + $0x70] sm:$0xff] }
 0x114   : > { %v432_v27 = vpop.xlane.xlu0 %431  ;;  %v443_v29 = vmul.f32 0.00390625, %v435_v26  ;;  %v2983_v26 = vld [vmem:[%s3366_s4 + $0x68] sm:$0xff] }
 0x115   : > { %2183 = vmatpush3.bf16.msra.mxu0 %v2182_v23  ;;  %v442_v30 = vmul.f32 0.00390625, %v432_v27  ;;  %753 = vrot.lane.b32.xlu1 %v2927_v18, %s2543_s10  ;;  %v2960_v23 = vld [vmem:[%s3366_s4 + $0x60] sm:$0xff] }
 0x116   : > { %2184 = vmatprep.subr.bf16.mxu0 %v2538_v44  ;;  %759 = vrot.lane.b32.xlu0 %v2932_v19, %s2543_s10  ;;  %v2988_v27 = vld [vmem:[%s3366_s4 + $0x80] sm:$0xff] }
 0x117   : > { %v369_v31 = vpop.xlane.xlu1 %368  ;;  %v2188_v35 = vpack.c.bf16 %v443_v29, %v442_v30  ;;  %v3002_v29 = vld [vmem:[%s3366_s4 + $0x90] sm:$0xff]  ;;  %v3011_v30 = vld [vmem:[%s3366_s4 + $0x88] sm:$0xff] }
 0x118   : > { %v389_v32 = vmul.f32 0.00390625, %v369_v31  ;;  %v366_v33 = vpop.xlane.xlu0 %365  ;;  %v3016_v31 = vld [vmem:[%s3366_s4 + $0xa0] sm:$0xff] }
 0x119   : > { %v388_v34 = vmul.f32 0.00390625, %v366_v33  ;;  %2186 = vmatpush3.bf16.msra.mxu0 %v2185_v28  ;;  %757 = vrot.lane.b32.xlu1 %v2941_v20, %s2543_s10  ;;  %v2997_v28 = vld [vmem:[%s3366_s4 + $0x78] sm:$0xff]  ;;  %v3030_v33 = vld [vmem:[%s3366_s4 + $0xb0] sm:$0xff] }
 0x11a   : > { %2187 = vmatprep.subr.bf16.mxu0 %v2538_v44  ;;  %763 = vrot.lane.b32.xlu0 %v2946_v21, %s2543_s10 }
 0x11b   : > { %v465_v36 = vpop.xlane.xlu1 %464  ;;  %v2191_v37 = vpack.c.bf16 %v389_v32, %v388_v34  ;;  %v3025_v32 = vld [vmem:[%s3366_s4 + $0x98] sm:$0xff]  ;;  %v3039_v34 = vld [vmem:[%s3366_s4 + $0xa8] sm:$0xff] }
 0x11c   : > { %v462_v38 = vpop.xlane.xlu0 %461  ;;  %v485_v59 = vmul.f32 0.00390625, %v465_v36 }
 0x11d   : > { %2189 = vmatpush3.bf16.msra.mxu0 %v2188_v35  ;;  %2192 = vmatpush3.bf16.msra.mxu1 %v2191_v37  ;;  %v484_v60 = vmul.f32 0.00390625, %v462_v38  ;;  %v3046_v35 = vld [vmem:[%s3366_s4 + $0xb8] sm:$0xff] }
 0x11e   : > { %2193 = vmatprep.subr.bf16.mxu1 %v2538_v44  ;;  %2202 = vmatprep.subr.bf16.mxu0 %v2538_v44 }
 0x11f   : > { %v375_v39 = vpop.xlane.xlu1 %374  ;;  %v2203_v62 = vpack.c.bf16 %v485_v59, %v484_v60  ;;  %761 = vrot.lane.b32.xlu1 %v2955_v22, %s2543_s10  ;;  %767 = vrot.lane.b32.xlu0 %v2960_v23, %s2543_s10 }
 0x120   : > { %v391_v40 = vmul.f32 0.00390625, %v375_v39  ;;  %v372_v41 = vpop.xlane.xlu0 %371 }
 0x121   : > { %v390_v42 = vmul.f32 0.00390625, %v372_v41 }
 0x123   : > { %v2194_v43 = vpack.c.bf16 %v391_v40, %v390_v42  ;;  %v471_v45 = vpop.xlane.xlu1 %470  ;;  %765 = vrot.lane.b32.xlu1 %v2969_v24, %s2543_s10  ;;  %771 = vrot.lane.b32.xlu0 %v2974_v25, %s2543_s10 }
 0x124   : > { %v468_v46 = vpop.xlane.xlu0 %467  ;;  %v487_v63 = vmul.f32 0.00390625, %v471_v45 }
 0x125   : > { %2195 = vmatpush3.bf16.msra.mxu1 %v2194_v43  ;;  %v486_v0 = vmul.f32 0.00390625, %v468_v46 }
 0x126   : > { %2196 = vmatprep.subr.bf16.mxu1 %v2538_v44 }
 0x127   : > { %v381_v47 = vpop.xlane.xlu1 %380  ;;  %v2206_v2 = vpack.c.bf16 %v487_v63, %v486_v0  ;;  %769 = vrot.lane.b32.xlu1 %v2983_v26, %s2543_s10  ;;  %775 = vrot.lane.b32.xlu0 %v2988_v27, %s2543_s10 }
 0x128   : > { %v393_v48 = vmul.f32 0.00390625, %v381_v47  ;;  %v378_v49 = vpop.xlane.xlu0 %377 }
 0x129   : > { %v392_v50 = vmul.f32 0.00390625, %v378_v49  ;;  %v323_v49 = vld [vmem:[%s3365_s3 + $0x18] sm:$0xf] }
 0x12b   : > { %v2197_v51 = vpack.c.bf16 %v393_v48, %v392_v50  ;;  %v477_v52 = vpop.xlane.xlu1 %476  ;;  %773 = vrot.lane.b32.xlu1 %v2997_v28, %s2543_s10  ;;  %779 = vrot.lane.b32.xlu0 %v3002_v29, %s2543_s10  ;;  %v1083_v50 = vrot.slane %v323_v49, 4 }
 0x12c   : > { %v474_v53 = vpop.xlane.xlu0 %473  ;;  %v489_v3 = vmul.f32 0.00390625, %v477_v52  ;;  %v1086_v52 = vrot.slane %v2859_v11, 4 }
 0x12d   : > { %2198 = vmatpush3.bf16.msra.mxu1 %v2197_v51  ;;  %v488_v4 = vmul.f32 0.00390625, %v474_v53  ;;  %v1087_v53 = vrot.slane %v2899_v14, 4 }
 0x12e   : > { %2199 = vmatprep.subr.bf16.mxu1 %v2538_v44 }
 0x12f   : > { %v387_v54 = vpop.xlane.xlu1 %386  ;;  %v2209_v6 = vpack.c.bf16 %v489_v3, %v488_v4  ;;  %777 = vrot.lane.b32.xlu1 %v3011_v30, %s2543_s10  ;;  %783 = vrot.lane.b32.xlu0 %v3016_v31, %s2543_s10 }
 0x130   : > { %v395_v55 = vmul.f32 0.00390625, %v387_v54  ;;  %v384_v56 = vpop.xlane.xlu0 %383  ;;  %v1088_v54 = vsel %vm864_vm3, %v1086_v52, %v1087_v53 }
 0x131   : > { %v394_v57 = vmul.f32 0.00390625, %v384_v56 }
 0x133   : > { %v2200_v58 = vpack.c.bf16 %v395_v55, %v394_v57  ;;  %v483_v5 = vpop.xlane.xlu1 %482  ;;  %781 = vrot.lane.b32.xlu1 %v3025_v32, %s2543_s10  ;;  %787 = vrot.lane.b32.xlu0 %v3030_v33, %s2543_s10 }
 0x134   : > { %v480_v61 = vpop.xlane.xlu0 %479  ;;  %v491_v7 = vmul.f32 0.00390625, %v483_v5 }
 0x135   : > { %2201 = vmatpush3.bf16.msra.mxu1 %v2200_v58  ;;  %v490_v8 = vmul.f32 0.00390625, %v480_v61 }
 0x137   : > { %v2212_v12 = vpack.c.bf16 %v491_v7, %v490_v8  ;;  %785 = vrot.lane.b32.xlu1 %v3039_v34, %s2543_s10  ;;  %v716_v42 = vpop.permute.xlu1 %715  ;;  %1089 = vrot.lane.b32.xlu0 %v1088_v54, %s2542_s15 }
 0x138   : > { %v494_v1 = vpop.permute.xlu0 %493  ;;  %2081 = vmatmul.mubr.msk.f32.vlgmr.msra.gmra.mrb[0].mxu1 %vm495_vm1, %v2853_v10 }
 0x139   : > { %2062 = vmatmul.mubr.msk.f32.vlgmr.msra.gmra.mrb[0].mxu0 %vm495_vm1, %v494_v1  ;;  %2104 = vmatprep.mubr.msk.f32.mxu1 %vm815_vm2, %v2859_v11 }
 0x13a   : > { %2204 = vmatpush3.bf16.msra.mxu0 %v2203_v62  ;;  %2099 = vmatprep.mubr.msk.f32.mxu0 %vm2539_vm0, %v2540_v9  ;;  %v2881_v9 = vld [vmem:[%s3365_s3 + $0x8] sm:$0xff] }
 0x13b   : > { %2205 = vmatprep.subr.bf16.mxu0 %v2538_v44  ;;  %789 = vrot.lane.b32.xlu1 %v3046_v35, %s2543_s10  ;;  %v1082_v48 = vrot.slane %v2881_v9, 4  ;;  %v744_v55 = vpop.permute.xlu1 %743 }
 0x13c   : > { %1167 = vrot.lane.b32.xlu0 %v2899_v14, %s2544_s8 }
 0x13d   : > { %v1084_v51 = vsel %vm864_vm3, %v1082_v48, %v1083_v50 }
 0x13e   : > { %2207 = vmatpush3.bf16.msra.mxu0 %v2206_v2 }
 0x13f   : > { %2208 = vmatprep.subr.bf16.mxu0 %v2538_v44  ;;  %1165 = vrot.lane.b32.xlu1 %v2859_v11, %s2544_s8 }
 0x140   : > { %1171 = vrot.lane.b32.xlu0 %v2913_v16, %s2544_s8 }
 0x142   : > { %2210 = vmatpush3.bf16.msra.mxu0 %v2209_v6 }
 0x143   : > { %2211 = vmatprep.subr.bf16.mxu0 %v2538_v44  ;;  %1169 = vrot.lane.b32.xlu1 %v2890_v13, %s2544_s8 }
 0x144   : > { %1175 = vrot.lane.b32.xlu0 %v2927_v18, %s2544_s8 }
 0x146   : > { %2213 = vmatpush3.bf16.msra.mxu0 %v2212_v12 }
 0x147   : > { %1173 = vrot.lane.b32.xlu1 %v2904_v15, %s2544_s8 }
 0x148   : > { %1179 = vrot.lane.b32.xlu0 %v2941_v20, %s2544_s8 }
 0x149   : > { %2100 = vmatmul.mubr.msk.f32.vlgmr.msra.gmra.mrb[2].mxu0 %vm495_vm1, %v2881_v9 }
 0x14b   : > { %1177 = vrot.lane.b32.xlu1 %v2918_v17, %s2544_s8 }
 0x14c   : > { %1183 = vrot.lane.b32.xlu0 %v2955_v22, %s2544_s8 }
 0x14f   : > { %1181 = vrot.lane.b32.xlu1 %v2932_v19, %s2544_s8 }
 0x150   : > { %1187 = vrot.lane.b32.xlu0 %v2969_v24, %s2544_s8 }
 0x153   : > { %1185 = vrot.lane.b32.xlu1 %v2946_v21, %s2544_s8 }
 0x154   : > { %1191 = vrot.lane.b32.xlu0 %v2983_v26, %s2544_s8 }
 0x157   : > { %1189 = vrot.lane.b32.xlu1 %v2960_v23, %s2544_s8 }
 0x158   : > { %1195 = vrot.lane.b32.xlu0 %v2997_v28, %s2544_s8 }
 0x15b   : > { %1193 = vrot.lane.b32.xlu1 %v2974_v25, %s2544_s8 }
 0x15c   : > { %1199 = vrot.lane.b32.xlu0 %v3011_v30, %s2544_s8 }
 0x15f   : > { %1197 = vrot.lane.b32.xlu1 %v2988_v27, %s2544_s8 }
 0x160   : > { %1203 = vrot.lane.b32.xlu0 %v3025_v32, %s2544_s8 }
 0x163   : > { %1201 = vrot.lane.b32.xlu1 %v3002_v29, %s2544_s8 }
 0x164   : > { %1209 = vrot.lane.b32.xlu0 %v3030_v33, %s2544_s8 }
 0x167   : > { %1205 = vrot.lane.b32.xlu1 %v3016_v31, %s2544_s8 }
 0x168   : > { %1211 = vrot.lane.b32.xlu0 %v3046_v35, %s2544_s8 }
 0x16b   : > { %1207 = vrot.lane.b32.xlu1 %v3039_v34, %s2544_s8 }
 0x16c   : > { %1215 = vrot.lane.b32.xlu0 %v2899_v14, %s2545_s11 }
 0x16f   : > { %1213 = vrot.lane.b32.xlu1 %v2859_v11, %s2545_s11 }
 0x170   : > { %1219 = vrot.lane.b32.xlu0 %v2913_v16, %s2545_s11 }
 0x173   : > { %1217 = vrot.lane.b32.xlu1 %v2890_v13, %s2545_s11 }
 0x174   : > { %1223 = vrot.lane.b32.xlu0 %v2927_v18, %s2545_s11 }
 0x177   : > { %1221 = vrot.lane.b32.xlu1 %v2904_v15, %s2545_s11 }
 0x178   : > { %1227 = vrot.lane.b32.xlu0 %v2941_v20, %s2545_s11 }
 0x17b   : > { %1225 = vrot.lane.b32.xlu1 %v2918_v17, %s2545_s11 }
 0x17c   : > { %v748_v58 = vpop.permute.xlu0 %747  ;;  %1231 = vrot.lane.b32.xlu0 %v2955_v22, %s2545_s11 }
 0x17f   : > { %v746_v56 = vpop.permute.xlu1 %745  ;;  %1229 = vrot.lane.b32.xlu1 %v2932_v19, %s2545_s11 }
 0x180   : > { %v752_v60 = vpop.permute.xlu0 %751  ;;  %1235 = vrot.lane.b32.xlu0 %v2969_v24, %s2545_s11 }
 0x183   : > { %v750_v57 = vpop.permute.xlu1 %749  ;;  %1233 = vrot.lane.b32.xlu1 %v2946_v21, %s2545_s11 }
 0x184   : > { %v756_v62 = vpop.permute.xlu0 %755  ;;  %1239 = vrot.lane.b32.xlu0 %v2983_v26, %s2545_s11 }
 0x187   : > { %v754_v59 = vpop.permute.xlu1 %753  ;;  %1237 = vrot.lane.b32.xlu1 %v2960_v23, %s2545_s11 }
 0x188   : > { %v760_v3 = vpop.permute.xlu0 %759  ;;  %1243 = vrot.lane.b32.xlu0 %v2997_v28, %s2545_s11 }
 0x18b   : > { %v758_v61 = vpop.permute.xlu1 %757  ;;  %1241 = vrot.lane.b32.xlu1 %v2974_v25, %s2545_s11 }
 0x18c   : > { %1247 = vrot.lane.b32.xlu0 %v3011_v30, %s2545_s11 }
 0x18f   : > { %1245 = vrot.lane.b32.xlu1 %v2988_v27, %s2545_s11 }
 0x190   : > { %1251 = vrot.lane.b32.xlu0 %v3025_v32, %s2545_s11 }
 0x191   : > { %v762_v0 = vpop.permute.xlu1 %761 }
 0x193   : > { %1249 = vrot.lane.b32.xlu1 %v3002_v29, %s2545_s11 }
 0x194   : > { %1255 = vrot.lane.b32.xlu0 %v3039_v34, %s2545_s11 }
 0x197   : > { %1253 = vrot.lane.b32.xlu1 %v3016_v31, %s2545_s11 }
 0x198   : > { %1259 = vrot.lane.b32.xlu0 %v3046_v35, %s2545_s11 }
 0x19b   : > { %1257 = vrot.lane.b32.xlu1 %v3030_v33, %s2545_s11 }
 0x20b   : > { %v636_v36 = vpop.f32.mrb[0].mxu1 }
 0x20c   : > { %v564_v37 = vpop.f32.mrb[0].mxu0  ;;  %v2082_v38 = vpop.f32.mrb[1].mxu1 }
 0x20d   : > { %v637_v39 = vadd.f32 %v636_v36, %v564_v37  ;;  %v2063_v40 = vpop.f32.mrb[1].mxu0  ;;  %v766_v37 = vpop.permute.xlu1 %765 }
 0x211   : > { %v770_v50 = vpop.permute.xlu1 %769 }
 0x21c   : > { %v709_v41 = vpop.f32.mrb[2].mxu0 }
 0x21d   : > { %v713_v43 = vadd.f32 %v709_v41, %v637_v39  ;;  %v2101_v45 = vpop.f32.mrb[3].mxu0  ;;  %v764_v39 = vpop.permute.xlu0 %763 }
 0x21f   : > { %v718_v46 = vadd.f32 %v716_v42, %v713_v43 }
 0x221   : > { %v719_v47 = vmax.f32 %v718_v46, 0.0  ;;  %v768_v53 = vpop.permute.xlu0 %767 }
 0x223   : > { %2102 = vmatprep.subr.msk.mxu1 %vm864_vm3, %v719_v47 }
 0x224   : > { %2103 = vmatpush3.msk.msra.mxu1 %vm864_vm3, %v719_v47 }
 0x225   : > { %2105 = vmatmul.mubr.msk.f32.vlgmr.msra.gmra.mrb[2].mxu1 %vm815_vm2, %v2899_v14  ;;  %2214 = vmatprep.subr.bf16.mxu1 %v2538_v44 }
 0x226   : > { %2107 = vmatprep.mubr.msk.f32.mxu1 %vm815_vm2, %v2890_v13 }
 0x229   : > { %2108 = vmatmul.mubr.msk.f32.gmra.mrb[4].mxu1 %vm815_vm2, %v2913_v16 }
 0x22a   : > { %2110 = vmatprep.mubr.msk.f32.mxu1 %vm815_vm2, %v2904_v15 }
 0x22d   : > { %2111 = vmatmul.mubr.msk.f32.gmra.mrb[6].mxu1 %vm815_vm2, %v2927_v18 }
 0x22e   : > { %2113 = vmatprep.mubr.msk.f32.mxu1 %vm815_vm2, %v2918_v17 }
 0x231   : > { %2114 = vmatmul.mubr.msk.f32.gmra.mrb[8].mxu1 %vm815_vm2, %v2941_v20 }
 0x232   : > { %2116 = vmatprep.mubr.msk.f32.mxu1 %vm815_vm2, %v2932_v19 }
 0x235   : > { %2117 = vmatmul.mubr.msk.f32.gmra.mrb[10].mxu1 %vm815_vm2, %v2955_v22 }
 0x236   : > { %2119 = vmatprep.mubr.msk.f32.mxu1 %vm815_vm2, %v2946_v21 }
 0x239   : > { %2120 = vmatmul.mubr.msk.f32.gmra.mrb[12].mxu1 %vm815_vm2, %v2969_v24 }
 0x23a   : > { %2122 = vmatprep.mubr.msk.f32.mxu1 %vm815_vm2, %v2960_v23 }
 0x23d   : > { %2123 = vmatmul.mubr.msk.f32.gmra.mrb[14].mxu1 %vm815_vm2, %v2983_v26 }
 0x23e   : > { %2125 = vmatprep.mubr.msk.f32.mxu1 %vm815_vm2, %v2974_v25 }
 0x241   : > { %2126 = vmatmul.mubr.msk.f32.gmra.mrb[16].mxu1 %vm815_vm2, %v2997_v28  ;;  %v2546_v28 = vmov 0  }
 0x242   : > { %2128 = vmatprep.mubr.msk.f32.mxu1 %vm815_vm2, %v2988_v27  ;;  %2322 = vset.pattern.permute.xlu1 %v2546_v28 }
 0x243   : > { %2321 = vset.pattern.permute.xlu0 %v2546_v28 }
 0x245   : > { %2129 = vmatmul.mubr.msk.f32.gmra.mrb[18].mxu1 %vm815_vm2, %v3011_v30 }
 0x246   : > { %2131 = vmatprep.mubr.msk.f32.mxu1 %vm815_vm2, %v3002_v29 }
 0x249   : > { %2132 = vmatmul.mubr.msk.f32.gmra.mrb[20].mxu1 %vm815_vm2, %v3025_v32 }
 0x24a   : > { %2134 = vmatprep.mubr.msk.f32.mxu1 %vm815_vm2, %v3016_v31 }
 0x24d   : > { %2135 = vmatmul.mubr.msk.f32.gmra.mrb[22].mxu1 %vm815_vm2, %v3039_v34 }
 0x24e   : > { %2137 = vmatprep.mubr.msk.f32.mxu1 %vm815_vm2, %v3030_v33 }
 0x251   : > { %2138 = vmatmul.mubr.msk.f32.gmra.mrb[24].mxu1 %vm815_vm2, %v3046_v35 }
 0x252   : > { %1934 = vmatprep.mubr.msk.f32.mxu1 %vm495_vm1, %v1084_v51 }
 0x2f8   : > { %v2106_v63 = vpop.f32.mrb[2].mxu1 }
 0x2f9   : > { %v940_v1 = vadd.f32 %v2106_v63, %v746_v56  ;;  %v934_v2 = vpop.f32.mrb[3].mxu1 }
 0x2fa   : > { %v935_v4 = vadd.f32 %v934_v2, %v744_v55  ;;  %v774_v2 = vpop.permute.xlu1 %773 }
 0x2fb   : > { %v1054_v5 = vmax.f32 %v940_v1, 0.0 }
 0x2fc   : > { %v1053_v6 = vmax.f32 %v935_v4, 0.0  ;;  %v2109_v7 = vpop.f32.mrb[4].mxu1 }
 0x2fd   : > { %v950_v8 = vadd.f32 %v2109_v7, %v750_v57  ;;  %v944_v12 = vpop.f32.mrb[5].mxu1 }
 0x2fe   : > { %v2215_v9 = vpack.c.bf16 %v1054_v5, %v1053_v6  ;;  %v945_v36 = vadd.f32 %v944_v12, %v748_v58  ;;  %v772_v5 = vpop.permute.xlu0 %771 }
 0x2ff   : > { %v1056_v38 = vmax.f32 %v950_v8, 0.0 }
 0x300   : > { %v1055_v40 = vmax.f32 %v945_v36, 0.0  ;;  %v2112_v41 = vpop.f32.mrb[6].mxu1  ;;  %2216 = vmatpush1.bf16.msra.mxu1 %v2215_v9 }
 0x301   : > { %v960_v42 = vadd.f32 %v2112_v41, %v754_v59  ;;  %v954_v43 = vpop.f32.mrb[7].mxu1  ;;  %2217 = vmatprep.subr.bf16.mxu1 %v2538_v44 }
 0x302   : > { %v2218_v45 = vpack.c.bf16 %v1056_v38, %v1055_v40  ;;  %v955_v46 = vadd.f32 %v954_v43, %v752_v60  ;;  %v778_v38 = vpop.permute.xlu1 %777 }
 0x303   : > { %v1058_v47 = vmax.f32 %v960_v42, 0.0 }
 0x304   : > { %v1057_v48 = vmax.f32 %v955_v46, 0.0  ;;  %v2115_v49 = vpop.f32.mrb[8].mxu1  ;;  %2219 = vmatpush1.bf16.msra.mxu1 %v2218_v45 }
 0x305   : > { %v970_v51 = vadd.f32 %v2115_v49, %v758_v61  ;;  %v964_v52 = vpop.f32.mrb[9].mxu1  ;;  %2220 = vmatprep.subr.bf16.mxu1 %v2538_v44 }
 0x306   : > { %v2221_v54 = vpack.c.bf16 %v1058_v47, %v1057_v48  ;;  %v965_v55 = vadd.f32 %v964_v52, %v756_v62 }
 0x307   : > { %v1060_v56 = vmax.f32 %v970_v51, 0.0  ;;  %v782_v51 = vpop.permute.xlu1 %781 }
 0x308   : > { %v1059_v57 = vmax.f32 %v965_v55, 0.0  ;;  %v2118_v58 = vpop.f32.mrb[10].mxu1  ;;  %2222 = vmatpush1.bf16.msra.mxu1 %v2221_v54 }
 0x309   : > { %v980_v59 = vadd.f32 %v2118_v58, %v762_v0  ;;  %v974_v63 = vpop.f32.mrb[11].mxu1  ;;  %2223 = vmatprep.subr.bf16.mxu1 %v2538_v44 }
 0x30a   : > { %v2224_v60 = vpack.c.bf16 %v1060_v56, %v1059_v57  ;;  %v975_v1 = vadd.f32 %v974_v63, %v760_v3  ;;  %v776_v3 = vpop.permute.xlu0 %775 }
 0x30b   : > { %v1062_v4 = vmax.f32 %v980_v59, 0.0 }
 0x30c   : > { %v1061_v61 = vmax.f32 %v975_v1, 0.0  ;;  %v2121_v6 = vpop.f32.mrb[12].mxu1  ;;  %2225 = vmatpush1.bf16.msra.mxu1 %v2224_v60  ;;  %v786_v1 = vpop.permute.xlu1 %785 }
 0x30d   : > { %v990_v7 = vadd.f32 %v2121_v6, %v766_v37  ;;  %v984_v8 = vpop.f32.mrb[13].mxu1  ;;  %2226 = vmatprep.subr.bf16.mxu1 %v2538_v44 }
 0x30e   : > { %v2227_v62 = vpack.c.bf16 %v1062_v4, %v1061_v61  ;;  %v985_v12 = vadd.f32 %v984_v8, %v764_v39  ;;  %v780_v54 = vpop.permute.xlu0 %779 }
 0x30f   : > { %v1064_v9 = vmax.f32 %v990_v7, 0.0 }
 0x310   : > { %v1063_v36 = vmax.f32 %v985_v12, 0.0  ;;  %v2124_v0 = vpop.f32.mrb[14].mxu1  ;;  %2228 = vmatpush1.bf16.msra.mxu1 %v2227_v62 }
 0x311   : > { %v1000_v40 = vadd.f32 %v2124_v0, %v770_v50  ;;  %v994_v41 = vpop.f32.mrb[15].mxu1  ;;  %2229 = vmatprep.subr.bf16.mxu1 %v2538_v44 }
 0x312   : > { %v2230_v42 = vpack.c.bf16 %v1064_v9, %v1063_v36  ;;  %v995_v43 = vadd.f32 %v994_v41, %v768_v53 }
 0x313   : > { %v1066_v45 = vmax.f32 %v1000_v40, 0.0 }
 0x314   : > { %v1065_v46 = vmax.f32 %v995_v43, 0.0  ;;  %v2127_v37 = vpop.f32.mrb[16].mxu1  ;;  %2231 = vmatpush1.bf16.msra.mxu1 %v2230_v42 }
 0x315   : > { %v1010_v47 = vadd.f32 %v2127_v37, %v774_v2  ;;  %v1004_v48 = vpop.f32.mrb[17].mxu1  ;;  %2232 = vmatprep.subr.bf16.mxu1 %v2538_v44 }
 0x316   : > { %v2233_v39 = vpack.c.bf16 %v1066_v45, %v1065_v46  ;;  %v1005_v49 = vadd.f32 %v1004_v48, %v772_v5  ;;  %v784_v5 = vpop.permute.xlu0 %783  ;;  %v322_v46 = vld [vmem:[%s3365_s3 + $0x10] sm:$0xf] }
 0x317   : > { %v1068_v52 = vmax.f32 %v1010_v47, 0.0 }
 0x318   : > { %v1067_v50 = vmax.f32 %v1005_v49, 0.0  ;;  %v2130_v55 = vpop.f32.mrb[18].mxu1  ;;  %2234 = vmatpush1.bf16.msra.mxu1 %v2233_v39  ;;  %v1079_v39 = vrot.slane %v2853_v10, 4 }
 0x319   : > { %v1020_v56 = vadd.f32 %v2130_v55, %v778_v38  ;;  %v1014_v57 = vpop.f32.mrb[19].mxu1  ;;  %2235 = vmatprep.subr.bf16.mxu1 %v2538_v44  ;;  %v790_v38 = vpop.permute.xlu1 %789 }
 0x31a   : > { %v2236_v53 = vpack.c.bf16 %v1068_v52, %v1067_v50  ;;  %v1015_v58 = vadd.f32 %v1014_v57, %v776_v3  ;;  %v788_v41 = vpop.permute.xlu0 %787 }
 0x31b   : > { %v1070_v59 = vmax.f32 %v1020_v56, 0.0 }
 0x31c   : > { %v1069_v63 = vmax.f32 %v1015_v58, 0.0  ;;  %v2133_v60 = vpop.f32.mrb[20].mxu1  ;;  %2237 = vmatpush1.bf16.msra.mxu1 %v2236_v53 }
 0x31d   : > { %v1030_v2 = vadd.f32 %v2133_v60, %v782_v51  ;;  %v1024_v4 = vpop.f32.mrb[21].mxu1  ;;  %2238 = vmatprep.subr.bf16.mxu1 %v2538_v44  ;;  %v1080_v51 = vrot.slane %v322_v46, 4  ;;  %v1166_v55 = vpop.permute.xlu1 %1165 }
 0x31e   : > { %v2239_v61 = vpack.c.bf16 %v1070_v59, %v1069_v63  ;;  %v1025_v6 = vadd.f32 %v1024_v4, %v780_v54  ;;  %v1090_v50 = vpop.permute.xlu0 %1089  ;;  %2142 = vmatprep.mubr.msk.f32.mxu0 %vm1285_vm4, %v1166_v55 }
 0x31f   : > { %v1072_v7 = vmax.f32 %v1030_v2, 0.0  ;;  %v1081_v54 = vsel %vm864_vm3, %v1079_v39, %v1080_v51 }
 0x320   : > { %v1071_v8 = vmax.f32 %v1025_v6, 0.0  ;;  %v2136_v62 = vpop.f32.mrb[22].mxu1  ;;  %2240 = vmatpush1.bf16.msra.mxu1 %v2239_v61 }
 0x321   : > { %v1040_v12 = vadd.f32 %v2136_v62, %v786_v1  ;;  %v1034_v9 = vpop.f32.mrb[23].mxu1  ;;  %2241 = vmatprep.subr.bf16.mxu1 %v2538_v44  ;;  %v1170_v11 = vpop.permute.xlu1 %1169 }
 0x322   : > { %v2242_v36 = vpack.c.bf16 %v1072_v7, %v1071_v8  ;;  %v1035_v0 = vadd.f32 %v1034_v9, %v784_v5  ;;  %v1168_v56 = vpop.permute.xlu0 %1167 }
 0x323   : > { %v1074_v40 = vmax.f32 %v1040_v12, 0.0 }
 0x324   : > { %v1073_v3 = vmax.f32 %v1035_v0, 0.0  ;;  %v2139_v42 = vpop.f32.mrb[24].mxu1  ;;  %2243 = vmatpush1.bf16.msra.mxu1 %v2242_v36 }
 0x325   : > { %v1050_v43 = vadd.f32 %v2139_v42, %v790_v38  ;;  %v1044_v45 = vpop.f32.mrb[25].mxu1  ;;  %2244 = vmatprep.subr.bf16.mxu1 %v2538_v44  ;;  %v1174_v13 = vpop.permute.xlu1 %1173 }
 0x326   : > { %v2245_v37 = vpack.c.bf16 %v1074_v40, %v1073_v3  ;;  %v1045_v47 = vadd.f32 %v1044_v45, %v788_v41  ;;  %v1172_v57 = vpop.permute.xlu0 %1171 }
 0x327   : > { %v1076_v48 = vmax.f32 %v1050_v43, 0.0 }
 0x328   : > { %v1075_v49 = vmax.f32 %v1045_v47, 0.0  ;;  %2246 = vmatpush1.bf16.msra.mxu1 %v2245_v37 }
 0x329   : > { %2247 = vmatprep.subr.bf16.mxu1 %v2538_v44  ;;  %v1178_v14 = vpop.permute.xlu1 %1177 }
 0x32a   : > { %v2248_v52 = vpack.c.bf16 %v1076_v48, %v1075_v49  ;;  %v1176_v53 = vpop.permute.xlu0 %1175 }
 0x32c   : > { %2249 = vmatpush1.bf16.msra.mxu1 %v2248_v52 }
 0x32d   : > { %v1182_v18 = vpop.permute.xlu1 %1181 }
 0x32e   : > { %v1180_v58 = vpop.permute.xlu0 %1179 }
 0x32f   : > { %1159 = vmatmul.mubr.f32.vlgmr.msra.gmra.mrb[26].mxu1 %v1081_v54 }
 0x331   : > { %v1186_v21 = vpop.permute.xlu1 %1185 }
 0x332   : > { %v1184_v10 = vpop.permute.xlu0 %1183 }
 0x335   : > { %v1190_v22 = vpop.permute.xlu1 %1189 }
 0x336   : > { %v1188_v59 = vpop.permute.xlu0 %1187 }
 0x339   : > { %v1194_v23 = vpop.permute.xlu1 %1193 }
 0x33a   : > { %v1192_v63 = vpop.permute.xlu0 %1191 }
 0x33d   : > { %v1198_v24 = vpop.permute.xlu1 %1197 }
 0x33e   : > { %v3150_v60 = vpop.permute.xlu0 %1195 }
 0x341   : > { %v1202_v25 = vpop.permute.xlu1 %1201 }
 0x342   : > { %v3152_v44 = vpop.permute.xlu0 %1199 }
 0x345   : > { %v1206_v26 = vpop.permute.xlu1 %1205 }
 0x346   : > { %v3154_v1 = vpop.permute.xlu0 %1203 }
 0x349   : > { %v1208_v27 = vpop.permute.xlu1 %1207 }
 0x34a   : > { %v1210_v2 = vpop.permute.xlu0 %1209 }
 0x34b   : > { %2175 = vmatprep.mubr.msk.f32.mxu1 %vm1285_vm4, %v1210_v2 }
 0x34d   : > { %v1214_v29 = vpop.permute.xlu1 %1213 }
 0x34e   : > { %v1212_v20 = vpop.permute.xlu0 %1211 }
 0x351   : > { %v1218_v31 = vpop.permute.xlu1 %1217 }
 0x352   : > { %v1216_v30 = vpop.permute.xlu0 %1215 }
 0x355   : > { %v1222_v33 = vpop.permute.xlu1 %1221 }
 0x356   : > { %v1220_v32 = vpop.permute.xlu0 %1219 }
 0x359   : > { %v1226_v35 = vpop.permute.xlu1 %1225 }
 0x35a   : > { %v1224_v34 = vpop.permute.xlu0 %1223 }
 0x35d   : > { %v1230_v5 = vpop.permute.xlu1 %1229 }
 0x35e   : > { %v1228_v4 = vpop.permute.xlu0 %1227 }
 0x361   : > { %v1234_v0 = vpop.permute.xlu1 %1233 }
 0x362   : > { %v1232_v61 = vpop.permute.xlu0 %1231 }
 0x365   : > { %v1238_v47 = vpop.permute.xlu1 %1237 }
 0x366   : > { %v1236_v43 = vpop.permute.xlu0 %1235 }
 0x402   : > { %v1160_v15 = vpop.f32.mrb[26].mxu1 }
 0x403   : > { %v1161_v16 = vadd.f32 %v1160_v15, %v1090_v50  ;;  %v1162_v17 = vpop.f32.mrb[27].mxu1  ;;  %v1240_v50 = vpop.permute.xlu0 %1239 }
 0x405   : > { %v1164_v19 = vmax.f32 %v1161_v16, 0.0 }
 0x407   : > { %2140 = vmatprep.subr.mxu0 %v1164_v19  ;;  %2250 = vmatprep.subr.mxu1 %v1164_v19 }
 0x408   : > { %2141 = vmatpush3.msra.mxu0 %v1164_v19  ;;  %2251 = vmatpush3.msra.mxu1 %v1164_v19 }
 0x409   : > { %2143 = vmatmul.mubr.msk.f32.vlgmr.msra.gmra.mrb[4].mxu0 %vm1285_vm4, %v1168_v56  ;;  %2176 = vmatmul.mubr.msk.f32.vlgmr.msra.gmra.mrb[28].mxu1 %vm1285_vm4, %v1212_v20 }
 0x40a   : > { %2145 = vmatprep.mubr.msk.f32.mxu0 %vm1285_vm4, %v1170_v11 }
 0x40d   : > { %2146 = vmatmul.mubr.msk.f32.gmra.mrb[6].mxu0 %vm1285_vm4, %v1172_v57 }
 0x40e   : > { %2148 = vmatprep.mubr.msk.f32.mxu0 %vm1285_vm4, %v1174_v13 }
 0x411   : > { %2149 = vmatmul.mubr.msk.f32.gmra.mrb[8].mxu0 %vm1285_vm4, %v1176_v53  ;;  %v1242_v53 = vpop.permute.xlu1 %1241 }
 0x412   : > { %2151 = vmatprep.mubr.msk.f32.mxu0 %vm1285_vm4, %v1178_v14 }
 0x415   : > { %2152 = vmatmul.mubr.msk.f32.gmra.mrb[10].mxu0 %vm1285_vm4, %v1180_v58  ;;  %v1246_v14 = vpop.permute.xlu1 %1245 }
 0x416   : > { %2154 = vmatprep.mubr.msk.f32.mxu0 %vm1285_vm4, %v1182_v18 }
 0x419   : > { %2155 = vmatmul.mubr.msk.f32.gmra.mrb[12].mxu0 %vm1285_vm4, %v1184_v10 }
 0x41a   : > { %2157 = vmatprep.mubr.msk.f32.mxu0 %vm1285_vm4, %v1186_v21 }
 0x41d   : > { %2158 = vmatmul.mubr.msk.f32.gmra.mrb[14].mxu0 %vm1285_vm4, %v1188_v59 }
 0x41e   : > { %2160 = vmatprep.mubr.msk.f32.mxu0 %vm1285_vm4, %v1190_v22 }
 0x421   : > { %2161 = vmatmul.mubr.msk.f32.gmra.mrb[16].mxu0 %vm1285_vm4, %v1192_v63 }
 0x422   : > { %2163 = vmatprep.mubr.msk.f32.mxu0 %vm1285_vm4, %v1194_v23 }
 0x425   : > { %2164 = vmatmul.mubr.msk.f32.gmra.mrb[18].mxu0 %vm1285_vm4, %v3150_v60 }
 0x426   : > { %2166 = vmatprep.mubr.msk.f32.mxu0 %vm1285_vm4, %v1198_v24 }
 0x429   : > { %2167 = vmatmul.mubr.msk.f32.gmra.mrb[20].mxu0 %vm1285_vm4, %v3152_v44 }
 0x42a   : > { %2169 = vmatprep.mubr.msk.f32.mxu0 %vm1285_vm4, %v1202_v25  ;;  %v1250_v25 = vpop.permute.xlu1 %1249 }
 0x42d   : > { %2170 = vmatmul.mubr.msk.f32.gmra.mrb[22].mxu0 %vm1285_vm4, %v3154_v1  ;;  %v1244_v1 = vpop.permute.xlu0 %1243 }
 0x42e   : > { %2172 = vmatprep.mubr.msk.f32.mxu0 %vm1285_vm4, %v1206_v26 }
 0x431   : > { %2173 = vmatmul.mubr.msk.f32.gmra.mrb[24].mxu0 %vm1285_vm4, %v1208_v27  ;;  %v1248_v21 = vpop.permute.xlu0 %1247 }
 0x4dc   : > { %v2144_v6 = vpop.f32.mrb[4].mxu0  ;;  %v3206_v7 = vpop.f32.mrb[28].mxu1 }
 0x4dd   : > { %v1406_v8 = vadd.f32 %v2144_v6, %v1216_v30  ;;  %v1400_v62 = vpop.f32.mrb[5].mxu0  ;;  %v3208_v12 = vpop.f32.mrb[29].mxu1 }
 0x4de   : > { %v1401_v9 = vadd.f32 %v1400_v62, %v1214_v29 }
 0x4df   : > { %v1520_v36 = vmax.f32 %v1406_v8, 0.0 }
 0x4e0   : > { %v1519_v38 = vmax.f32 %v1401_v9, 0.0  ;;  %v2147_v40 = vpop.f32.mrb[6].mxu0 }
 0x4e1   : > { %v1416_v41 = vadd.f32 %v2147_v40, %v1220_v32  ;;  %v1410_v3 = vpop.f32.mrb[7].mxu0  ;;  %1550 = vperm.xlu0 %2321, %v1520_v36   ;;  %v1252_v32 = vpop.permute.xlu0 %1251 }
 0x4e2   : > { %1545 = vperm.xlu1 %2322, %v1519_v38   ;;  %v1411_v45 = vadd.f32 %v1410_v3, %v1218_v31 }
 0x4e3   : > { %v1522_v42 = vmax.f32 %v1416_v41, 0.0 }
 0x4e4   : > { %v2150_v46 = vpop.f32.mrb[8].mxu0  ;;  %v1521_v49 = vmax.f32 %v1411_v45, 0.0 }
 0x4e5   : > { %v1420_v37 = vpop.f32.mrb[9].mxu0  ;;  %v1426_v39 = vadd.f32 %v2150_v46, %v1224_v34  ;;  %v1256_v36 = vpop.permute.xlu0 %1255 }
 0x4e6   : > { %v1421_v48 = vadd.f32 %v1420_v37, %v1222_v33  ;;  %1560 = vperm.xlu1 %2322, %v1522_v42  }
 0x4e7   : > { %v1524_v55 = vmax.f32 %v1426_v39, 0.0 }
 0x4e8   : > { %v1523_v51 = vmax.f32 %v1421_v48, 0.0  ;;  %v2153_v52 = vpop.f32.mrb[10].mxu0 }
 0x4e9   : > { %v1430_v54 = vpop.f32.mrb[11].mxu0  ;;  %v1436_v57 = vadd.f32 %v2153_v52, %v1228_v4  ;;  %v1254_v4 = vpop.permute.xlu1 %1253 }
 0x4ea   : > { %v1431_v56 = vadd.f32 %v1430_v54, %v1226_v35  ;;  %1565 = vperm.xlu0 %2321, %v1523_v51   ;;  %1555 = vperm.xlu1 %2322, %v1521_v49   ;;  %v1260_v48 = vpop.permute.xlu0 %1259 }
 0x4eb   : > { %v1526_v63 = vmax.f32 %v1436_v57, 0.0  ;;  %v1516_v52 = vadd.f32 %v3206_v7, %v1260_v48 }
 0x4ec   : > { %v1525_v58 = vmax.f32 %v1431_v56, 0.0  ;;  %v2156_v10 = vpop.f32.mrb[12].mxu0 }
 0x4ed   : > { %v1440_v59 = vpop.f32.mrb[13].mxu0  ;;  %v1446_v44 = vadd.f32 %v2156_v10, %v1232_v61  ;;  %v1258_v41 = vpop.permute.xlu1 %1257  ;;  %v1542_v54 = vmax.f32 %v1516_v52, 0.0 }
 0x4ee   : > { %v1441_v60 = vadd.f32 %v1440_v59, %v1230_v5  ;;  %1575 = vperm.xlu0 %2321, %v1525_v58   ;;  %1570 = vperm.xlu1 %2322, %v1524_v55  }
 0x4ef   : > { %v1528_v15 = vmax.f32 %v1446_v44, 0.0 }
 0x4f0   : > { %v1527_v2 = vmax.f32 %v1441_v60, 0.0  ;;  %v2159_v11 = vpop.f32.mrb[14].mxu0 }
 0x4f1   : > { %v1450_v13 = vpop.f32.mrb[15].mxu0  ;;  %v1456_v17 = vadd.f32 %v2159_v11, %v1236_v43  ;;  %v2323_v11 = vld [vmem:[%s2779_s1 + $0x10] sm:$0xff] }
 0x4f2   : > { %v1451_v16 = vadd.f32 %v1450_v13, %v1234_v0  ;;  %1601 = vperm.xlu0 %2321, %v1527_v2   ;;  %1580 = vperm.xlu1 %2322, %v1526_v63  }
 0x4f3   : > { %v1530_v22 = vmax.f32 %v1456_v17, 0.0 }
 0x4f4   : > { %v1529_v18 = vmax.f32 %v1451_v16, 0.0  ;;  %v2162_v19 = vpop.f32.mrb[16].mxu0  ;;  %v2325_v16 = vld [vmem:[%s2787_s27] sm:$0xff] }
 0x4f5   : > { %v1460_v20 = vpop.f32.mrb[17].mxu0  ;;  %v1466_v24 = vadd.f32 %v2162_v19, %v1240_v50 }
 0x4f6   : > { %v1461_v23 = vadd.f32 %v1460_v20, %v1238_v47  ;;  %1611 = vperm.xlu0 %2321, %v1529_v18   ;;  %1606 = vperm.xlu1 %2322, %v1528_v15   ;;  %v1511_v47 = vadd.f32 %v3208_v12, %v1258_v41  ;;  %v2326_v18 = vld [vmem:[%s2787_s27 + $0x8] sm:$0xff]  ;;  %v2327_v20 = vld [vmem:[%s2779_s1] sm:$0xff] }
 0x4f7   : > { %v1532_v29 = vmax.f32 %v1466_v24, 0.0  ;;  %v2329_v24 = vld [vmem:[%s2779_s1 + $0x30] sm:$0xff] }
 0x4f8   : > { %v1531_v26 = vmax.f32 %v1461_v23, 0.0  ;;  %v2165_v27 = vpop.f32.mrb[18].mxu0  ;;  %v1541_v51 = vmax.f32 %v1511_v47, 0.0  ;;  %v2342_v47 = vld [vmem:[%s2779_s1 + $0x68] sm:$0xff] }
 0x4f9   : > { %v1470_v28 = vpop.f32.mrb[19].mxu0  ;;  %v1476_v31 = vadd.f32 %v2165_v27, %v1244_v1 }
 0x4fa   : > { %v1471_v30 = vadd.f32 %v1470_v28, %v1242_v53  ;;  %1621 = vperm.xlu0 %2321, %v1531_v26   ;;  %1616 = vperm.xlu1 %2322, %v1530_v22   ;;  %v2328_v22 = vld [vmem:[%s2779_s1 + $0x8] sm:$0xff]  ;;  %v2330_v26 = vld [vmem:[%s2779_s1 + $0x38] sm:$0xff]  ;;  %v2331_v28 = vld [vmem:[%s2779_s1 + $0x40] sm:$0xff] }
 0x4fb   : > { %v1534_v5 = vmax.f32 %v1476_v31, 0.0 }
 0x4fc   : > { %v1533_v33 = vmax.f32 %v1471_v30, 0.0  ;;  %v2168_v34 = vpop.f32.mrb[20].mxu0  ;;  %v2332_v30 = vld [vmem:[%s2779_s1 + $0x48] sm:$0xff] }
 0x4fd   : > { %v1480_v35 = vpop.f32.mrb[21].mxu0  ;;  %v1486_v6 = vadd.f32 %v2168_v34, %v1248_v21  ;;  %v2334_v34 = vld [vmem:[%s2787_s27 + $0x28] sm:$0xff] }
 0x4fe   : > { %v1481_v61 = vadd.f32 %v1480_v35, %v1246_v14  ;;  %1631 = vperm.xlu0 %2321, %v1533_v33   ;;  %1626 = vperm.xlu1 %2322, %v1532_v29   ;;  %v2324_v14 = vld [vmem:[%s2779_s1 + $0x18] sm:$0xff] }
 0x4ff   : > { %v1536_v0 = vmax.f32 %v1486_v6, 0.0 }
 0x500   : > { %v1535_v8 = vmax.f32 %v1481_v61, 0.0  ;;  %v2171_v62 = vpop.f32.mrb[22].mxu0  ;;  %v2336_v61 = vld [vmem:[%s2779_s1 + $0x28] sm:$0xff] }
 0x501   : > { %v1490_v9 = vpop.f32.mrb[23].mxu0  ;;  %v1496_v40 = vadd.f32 %v2171_v62, %v1252_v32  ;;  %v2333_v32 = vld [vmem:[%s2787_s27 + $0x20] sm:$0xff] }
 0x502   : > { %v1491_v38 = vadd.f32 %v1490_v9, %v1250_v25  ;;  %1673 = vperm.xlu0 %2321, %v1535_v8   ;;  %1636 = vperm.xlu1 %2322, %v1534_v5   ;;  %v2337_v8 = vld [vmem:[%s2787_s27 + $0x10] sm:$0xff]  ;;  %v2338_v9 = vld [vmem:[%s2787_s27 + $0x18] sm:$0xff] }
 0x503   : > { %v1538_v45 = vmax.f32 %v1496_v40, 0.0 }
 0x504   : > { %v1537_v3 = vmax.f32 %v1491_v38, 0.0  ;;  %v2174_v42 = vpop.f32.mrb[24].mxu0 }
 0x505   : > { %v1500_v43 = vpop.f32.mrb[25].mxu0  ;;  %v1506_v37 = vadd.f32 %v2174_v42, %v1256_v36 }
 0x506   : > { %v1501_v46 = vadd.f32 %v1500_v43, %v1254_v4  ;;  %1683 = vperm.xlu0 %2321, %v1537_v3   ;;  %1678 = vperm.xlu1 %2322, %v1536_v0   ;;  %v2335_v4 = vld [vmem:[%s2779_s1 + $0x20] sm:$0xff]  ;;  %v2340_v43 = vld [vmem:[%s2814_s28 + $0x8] sm:$0xff] }
 0x507   : > { %v1540_v49 = vmax.f32 %v1506_v37, 0.0  ;;  %v2339_v3 = vld [vmem:[%s2814_s28] sm:$0xff] }
 0x508   : > { %v1539_v39 = vmax.f32 %v1501_v46, 0.0  ;;  %v2341_v46 = vld [vmem:[%s2779_s1 + $0x60] sm:$0xff] }
 0x50a   : > { %1693 = vperm.xlu0 %2321, %v1539_v39   ;;  %1688 = vperm.xlu1 %2322, %v1538_v45   ;;  %v2343_v39 = vld [vmem:[%s2787_s27 + $0x40] sm:$0xff] }
 0x50e   : > { %1703 = vperm.xlu0 %2321, %v1541_v51   ;;  %1698 = vperm.xlu1 %2322, %v1540_v49   ;;  %v2344_v51 = vld [vmem:[%s2787_s27 + $0x48] sm:$0xff] }
 0x512   : > { %1708 = vperm.xlu1 %2322, %v1542_v54  }
 0x560   : > { %v1551_v55 = vpop.permute.xlu0 %1550 }
 0x561   : > { %v1546_v50 = vpop.permute.xlu1 %1545  ;;  %v1585_v13 = vmul.f32 %v2323_v11, %v1551_v55  ;;  %v1586_v15 = vmul.f32 %v2324_v14, %v1551_v55 }
 0x562   : > { %v1583_v21 = vmul.f32 %v2327_v20, %v1546_v50  ;;  %v1584_v23 = vmul.f32 %v2328_v22, %v1546_v50  ;;  %v2351_v22 = vld [vmem:[%s2787_s27 + $0x60] sm:$0xff] }
 0x565   : > { %v1561_v56 = vpop.permute.xlu1 %1560 }
 0x566   : > { %v3227_v25 = vmul.f32 %v2329_v24, %v1561_v56  ;;  %v3230_v27 = vmul.f32 %v2330_v26, %v1561_v56  ;;  %v2352_v24 = vld [vmem:[%s2787_s27 + $0x68] sm:$0xff] }
 0x569   : > { %v1566_v57 = vpop.permute.xlu0 %1565  ;;  %v1556_v12 = vpop.permute.xlu1 %1555 }
 0x56a   : > { %v1591_v29 = vmul.f32 %v2331_v28, %v1566_v57  ;;  %v1592_v31 = vmul.f32 %v2332_v30, %v1566_v57  ;;  %v1587_v5 = vmul.f32 %v2335_v4, %v1556_v12  ;;  %v1588_v6 = vmul.f32 %v2336_v61, %v1556_v12  ;;  %v2354_v4 = vld [vmem:[%s2787_s27 + $0x58] sm:$0xff] }
 0x56d   : > { %v1576_v53 = vpop.permute.xlu0 %1575  ;;  %v3212_v58 = vpop.permute.xlu1 %1570 }
 0x56e   : > { %v3245_v37 = vmul.f32 %v2341_v46, %v1576_v53  ;;  %v3248_v48 = vmul.f32 %v2342_v47, %v1576_v53 }
 0x571   : > { %v1602_v10 = vpop.permute.xlu0 %1601  ;;  %v3214_v59 = vpop.permute.xlu1 %1580 }
 0x572   : > { %v1639_v17 = vmul.f32 %v2325_v16, %v1602_v10  ;;  %v1640_v19 = vmul.f32 %v2326_v18, %v1602_v10  ;;  %v2345_v10 = vld [vmem:[%s2787_s27 + $0x30] sm:$0xff] }
 0x574   : > { %v1655_v40 = vadd.f32 %v1639_v17, %v1583_v21  ;;  %v1656_v41 = vadd.f32 %v1640_v19, %v1584_v23  ;;  %v2348_v17 = vld [vmem:[%s2814_s28 + $0x28] sm:$0xff]  ;;  %v2350_v19 = vld [vmem:[%s2814_s28 + $0x18] sm:$0xff] }
 0x575   : > { %v1612_v7 = vpop.permute.xlu0 %1611  ;;  %v1607_v63 = vpop.permute.xlu1 %1606 }
 0x576   : > { %v1643_v33 = vmul.f32 %v2333_v32, %v1612_v7  ;;  %v1644_v35 = vmul.f32 %v2334_v34, %v1612_v7  ;;  %v1641_v62 = vmul.f32 %v2337_v8, %v1607_v63  ;;  %v1642_v36 = vmul.f32 %v2338_v9, %v1607_v63  ;;  %v2346_v63 = vld [vmem:[%s2787_s27 + $0x38] sm:$0xff]  ;;  %v2356_v8 = vld [vmem:[%s2814_s28 + $0x48] sm:$0xff] }
 0x578   : > { %v1659_v54 = vadd.f32 %v1643_v33, %v1587_v5  ;;  %v1660_v50 = vadd.f32 %v1644_v35, %v1588_v6  ;;  %v1657_v57 = vadd.f32 %v1641_v62, %v1585_v13  ;;  %v1658_v12 = vadd.f32 %v1642_v36, %v1586_v15  ;;  %v2349_v15 = vld [vmem:[%s2814_s28 + $0x10] sm:$0xff]  ;;  %v2355_v6 = vld [vmem:[%s2814_s28 + $0x40] sm:$0xff]  ;;  %v2358_v36 = vld [vmem:[%s2814_s28 + $0x38] sm:$0xff] }
 0x579   : > { %v1622_v60 = vpop.permute.xlu0 %1621  ;;  %v1617_v44 = vpop.permute.xlu1 %1616 }
 0x57a   : > { %v1647_v49 = vmul.f32 %v2343_v39, %v1622_v60  ;;  %v1648_v52 = vmul.f32 %v2344_v51, %v1622_v60  ;;  %v1645_v7 = vmul.f32 %v2345_v10, %v1617_v44  ;;  %v1646_v53 = vmul.f32 %v2346_v63, %v1617_v44  ;;  %v2347_v60 = vld [vmem:[%s2814_s28 + $0x20] sm:$0xff]  ;;  %v2365_v10 = vld [vmem:[%s2814_s28 + $0x50] sm:$0xff]  ;;  %v2366_v63 = vld [vmem:[%s2814_s28 + $0x58] sm:$0xff] }
 0x57c   : > { %v1663_v20 = vadd.f32 %v1647_v49, %v1591_v29  ;;  %v1664_v21 = vadd.f32 %v1648_v52, %v1592_v31  ;;  %v1661_v34 = vadd.f32 %v1645_v7, %v3227_v25  ;;  %v1662_v29 = vadd.f32 %v1646_v53, %v3230_v27  ;;  %v2353_v31 = vld [vmem:[%s2787_s27 + $0x50] sm:$0xff] }
 0x57d   : > { %v3216_v1 = vpop.permute.xlu0 %1631  ;;  %v3218_v2 = vpop.permute.xlu1 %1626  ;;  %v2357_v27 = vld [vmem:[%s2814_s28 + $0x30] sm:$0xff] }
 0x57e   : > { %v1651_v23 = vmul.f32 %v2351_v22, %v3216_v1  ;;  %v1652_v26 = vmul.f32 %v2352_v24, %v3216_v1  ;;  %v1649_v35 = vmul.f32 %v2353_v31, %v3218_v2  ;;  %v1650_v1 = vmul.f32 %v2354_v4, %v3218_v2  ;;  %v2361_v52 = vld [vmem:[%s2787_s27 + $0x70] sm:$0xff] }
 0x581   : > { %v1674_v0 = vpop.permute.xlu0 %1673  ;;  %v3240_v38 = vpop.permute.xlu1 %1636 }
 0x582   : > { %v1711_v42 = vmul.f32 %v2339_v3, %v1674_v0  ;;  %v1712_v45 = vmul.f32 %v2340_v43, %v1674_v0  ;;  %v1668_v43 = vadd.f32 %v1652_v26, %v3248_v48 }
 0x584   : > { %v1727_v55 = vadd.f32 %v1711_v42, %v1655_v40  ;;  %v1728_v56 = vadd.f32 %v1712_v45, %v1656_v41  ;;  %v2359_v40 = vld [vmem:[%s2779_s1 + $0x50] sm:$0xff]  ;;  %v2360_v41 = vld [vmem:[%s2779_s1 + $0x58] sm:$0xff]  ;;  %v1667_v42 = vadd.f32 %v1651_v23, %v3245_v37 }
 0x585   : > { %v1684_v11 = vpop.permute.xlu0 %1683  ;;  %v1679_v14 = vpop.permute.xlu1 %1678  ;;  %v1593_v2 = vmul.f32 %v2359_v40, %v3212_v58  ;;  %v1594_v3 = vmul.f32 %v2360_v41, %v3212_v58  ;;  %v1653_v58 = vmul.f32 %v2361_v52, %v3240_v38 }
 0x586   : > { %1743 = vst [vmem:[%s3255_s9] sm:$0xff] %v1727_v55  ;;  %1744 = vst [vmem:[%s3255_s9 + $0x8] sm:$0xff] %v1728_v56  ;;  %v1715_v16 = vmul.f32 %v2347_v60, %v1684_v11  ;;  %v1716_v13 = vmul.f32 %v2348_v17, %v1684_v11  ;;  %v1713_v18 = vmul.f32 %v2349_v15, %v1679_v14  ;;  %v2363_v55 = vld [vmem:[%s2814_s28 + $0x60] sm:$0xff] }
 0x587   : > { %v1714_v44 = vmul.f32 %v2350_v19, %v1679_v14  ;;  %v1665_v49 = vadd.f32 %v1649_v35, %v1593_v2  ;;  %v1666_v51 = vadd.f32 %v1650_v1, %v1594_v3  ;;  %v2368_v14 = vld [vmem:[%s2779_s1 + $0x78] sm:$0xff] }
 0x588   : > { %v1731_v28 = vadd.f32 %v1715_v16, %v1659_v54  ;;  %v1732_v30 = vadd.f32 %v1716_v13, %v1660_v50  ;;  %v1729_v32 = vadd.f32 %v1713_v18, %v1657_v57  ;;  %v2362_v54 = vld [vmem:[%s2787_s27 + $0x78] sm:$0xff]  ;;  %v2364_v57 = vld [vmem:[%s2814_s28 + $0x68] sm:$0xff]  ;;  %v1598_v60 = vmul.f32 %v2368_v14, %v3214_v59  ;;  %s1773_s27 = sshll.u32 %s3255_s9, 4  ;;  %s3316_s27 = int_to_ptr.vmem [resolvable:$true] %s1773_s27 }
 0x589   : > { %v1730_v33 = vadd.f32 %v1714_v44, %v1658_v12  ;;  %v1694_v5 = vpop.permute.xlu0 %1693  ;;  %v1689_v61 = vpop.permute.xlu1 %1688  ;;  %v1654_v37 = vmul.f32 %v2362_v54, %v3240_v38  ;;  %v2367_v38 = vld [vmem:[%s2779_s1 + $0x70] sm:$0xff]  ;;  %s2461_s17 = scalar_lea.vmem %s3316_s27, 2048 }
 0x58a   : > { %1747 = vst [vmem:[%s3255_s9 + $0x20] sm:$0xff] %v1731_v28  ;;  %1748 = vst [vmem:[%s3255_s9 + $0x28] sm:$0xff] %v1732_v30  ;;  %v1719_v25 = vmul.f32 %v2355_v6, %v1694_v5  ;;  %v1720_v62 = vmul.f32 %v2356_v8, %v1694_v5  ;;  %v1717_v9 = vmul.f32 %v2357_v27, %v1689_v61  ;;  %p2462_p13 = scmp.ne.s32.totalorder %s3316_s27, %s2461_s17 }
 0x58b   : > { %1745 = vst [vmem:[%s3255_s9 + $0x10] sm:$0xff] %v1729_v32  ;;  %1746 = vst [vmem:[%s3255_s9 + $0x18] sm:$0xff] %v1730_v33  ;;  %v1718_v0 = vmul.f32 %v2358_v36, %v1689_v61  ;;  %v1597_v11 = vmul.f32 %v2367_v38, %v3214_v59  ;;  %v1670_v44 = vadd.f32 %v1654_v37, %v1598_v60 }
 0x58c   : > { %v1735_v45 = vadd.f32 %v1719_v25, %v1663_v20  ;;  %v1736_v46 = vadd.f32 %v1720_v62, %v1664_v21  ;;  %v1733_v47 = vadd.f32 %v1717_v9, %v1661_v34  ;;  %v2369_v20 = vld [vmem:[%s2814_s28 + $0x70] sm:$0xff]  ;;  %v2370_v21 = vld [vmem:[%s2814_s28 + $0x78] sm:$0xff]  ;;  %p2463_p6 = pnand %p2462_p13, %p3392_p7  ;;  %s2547_s28 = smov [#allocation8]  }
 0x58d   : > { %v1734_v39 = vadd.f32 %v1718_v0, %v1662_v29  ;;  %v1704_v50 = vpop.permute.xlu0 %1703  ;;  %v1699_v48 = vpop.permute.xlu1 %1698  ;;  %v1669_v19 = vadd.f32 %v1653_v58, %v1597_v11  ;;  %s2465_s13 = sshll.u32 %s2547_s28, 4  ;;  %s2466_s13 = int_to_ptr.vmem [resolvable:$false] %s2465_s13 }
 0x58e   : > { %1751 = vst [vmem:[%s3255_s9 + $0x40] sm:$0xff] %v1735_v45  ;;  %1752 = vst [vmem:[%s3255_s9 + $0x48] sm:$0xff] %v1736_v46  ;;  %v1723_v56 = vmul.f32 %v2363_v55, %v1704_v50  ;;  %v1724_v12 = vmul.f32 %v2364_v57, %v1704_v50  ;;  %v1721_v7 = vmul.f32 %v2365_v10, %v1699_v48  ;;  %p2464_p9 = pneg %p2463_p6  ;;  %s2467_s14 = scalar_lea.vmem %s2466_s13, 4096 }
 0x58f   : > { %1749 = vst [vmem:[%s3255_s9 + $0x30] sm:$0xff] %v1733_v47  ;;  %1750 = vst [vmem:[%s3255_s9 + $0x38] sm:$0xff] %v1734_v39  ;;  %v1722_v53 = vmul.f32 %v2366_v63, %v1699_v48  ;;  %p2468_p12 = scmp.lt.s32.totalorder %s3316_s27, %s2466_s13  ;;  %p2469_p0 = scmp.lt.s32.totalorder %s2467_s14, %s2461_s17 }
 0x590   : > { %v1739_v16 = vadd.f32 %v1723_v56, %v1667_v42  ;;  %v1740_v17 = vadd.f32 %v1724_v12, %v1668_v43  ;;  %v1737_v13 = vadd.f32 %v1721_v7, %v1665_v49 }
 0x591   : > { %v1738_v15 = vadd.f32 %v1722_v53, %v1666_v51  ;;  %v1709_v18 = vpop.permute.xlu1 %1708  ;;  %p2470_p8 = por %p2469_p0, %p2468_p12 }
 0x592   : > { %1755 = vst [vmem:[%s3255_s9 + $0x60] sm:$0xff] %v1739_v16  ;;  %1756 = vst [vmem:[%s3255_s9 + $0x68] sm:$0xff] %v1740_v17  ;;  %v1725_v59 = vmul.f32 %v2369_v20, %v1709_v18  ;;  %v1726_v22 = vmul.f32 %v2370_v21, %v1709_v18 }
 0x593   : > { %1753 = vst [vmem:[%s3255_s9 + $0x50] sm:$0xff] %v1737_v13  ;;  %1754 = vst [vmem:[%s3255_s9 + $0x58] sm:$0xff] %v1738_v15  ;;  %p2471_p10 = pnand %p2470_p8, %p2464_p9 }
 0x594   : > { %v1741_v23 = vadd.f32 %v1725_v59, %v1669_v19  ;;  %v1742_v24 = vadd.f32 %v1726_v22, %v1670_v44 }
 0x596   : > { %1757 = vst [vmem:[%s3255_s9 + $0x70] sm:$0xff] %v1741_v23  ;;  %1758 = vst [vmem:[%s3255_s9 + $0x78] sm:$0xff] %v1742_v24 }
 0x597   : > { %2474 = shalt.err (!%p2471_p10)
}
 0x598   : > { %s2475_s6 = scalar_lea.hbm %s3314_s22, 2048  ;;  %s2479_s7 = scalar_lea.hbm %s3367_s5, 4096 }
 0x599   : > { %p2476_p11 = scmp.ne.s32.totalorder %s3314_s22, %s2475_s6  ;;  %p2480_p5 = scmp.lt.u32.totalorder %s3314_s22, %s3367_s5 }
 0x59a   : > { %p2481_p2 = scmp.lt.u32.totalorder %s2479_s7, %s2475_s6  ;;  %p2483_p13 = scmp.lt.u32.totalorder %s2475_s6, %s3314_s22 }
 0x59b   : > { %p2477_p4 = pnand %p2476_p11, %p3392_p7 }
 0x59c   : > { %p2482_p1 = por %p2481_p2, %p2480_p5 }
 0x59d   : > { %p2478_p3 = pneg %p2477_p4 }
 0x59e   : > { %p2484_p6 = por %p2483_p13, %p2482_p1 }
 0x5a0   : > { %p2485_p9 = pnand %p2484_p6, %p2478_p3 }
 0x5a2   : > { %2488 = shalt.err (!%p2485_p9)
}
 0x5a3   : > { %s2548_s0 = smov 256   ;;  %s2549_s11 = smov 16  }
 0x5a4   : > { %2258 = dma.vmem_to_hbm [thread:$0]  (%p3392_p7), %s3316_s27, 2048, %s3314_s22, %s1760_s26, %s2548_s0, %s2548_s0, %s2549_s11  }
 0x5a5 PF: > { %s1788_s9 = sand.u32 1, %s2519_s18   ;;  %p3393_p12 = scmp.ne.s32.totalorder %s3380_s30, 0 }
 0x5a6   : > { %p3394_p0 = scmp.ge.s32.totalorder %s2531_s21, 2  ;;  %s1789_s12 = scalar_lea.sflag [#allocation4], %s1788_s9 }
 0x5a8   : > { %p2271_p8 = pnand %p3394_p0, %p3393_p12 }
 0x5aa   : > { %2514 = dma.done.wait (!%p2271_p8), %s1789_s12, 2048  }
 0x5ab   : > { %2516 = vsyncadd (!%p2271_p8), %s1789_s12, 4294965248  ;;  %s3395_s1 = sld [smem:[#allocation12_spill]]  ;;  %p21_p10 = scmp.ge.s32.totalorder %s2605_s24, 4  }
 0x5ac   : > { %s3396_s18 = smov %s2523_s19  ;;  %s3397_s19 = smov %s2527_s20 }
 0x5ad   : > { %s3399_s21 = smov %s2605_s24  ;;  %23 = sbr.rel (!%p21_p10) target bundleno = 10 (0xa), region = 109 }
 0x5b1   : > { %s3398_s20 = smov %s3395_s1 }
 0x5b4   :  { %1794 = vsyncpa [#allocation3], 1 }
 0x5b5   :  { %1796 = vsyncpa [#allocation3 + $0x1], 1 }
 0x5b6   :  { %1797 = vsyncpa [#allocation6], 1 }
 0x5b7   :  { %1799 = vsyncpa [#allocation6 + $0x1], 1 }
 0x5b8   :  { %1800 = vsyncpa [#allocation4], 1 }
 0x5b9   :  { %1802 = vsyncpa [#allocation4 + $0x1], 1 }

</bundles_post_ra>
